<compile_context>
chip_gen: v7x
topology: tpu7x:2x2x1
jax: 0.10.0
libtpu: 0.0.40
codegen_flags: <defaults>
</compile_context>

<pallas_src>
import math

import jax
import jax.numpy as jnp
from jax.experimental import pallas as pl
from jax.experimental.pallas import tpu as pltpu

LAYER_SIZE = 128


# ---------------------------------------------------------------------------
# Kernel
# ---------------------------------------------------------------------------
def icm_kernel(
    # batch-tiled inputs
    x_ref,          # (tb, 2*state_dim) bf16  = [state | next_state]
    action_ref,     # (tb, action_dim)  bf16
    eps_ref,        # (tb, action_dim)  f32
    # resident params
    fe_w1_ref, fe_b1_ref,      # block-diag encoder layer 1: (2*sd, 256), (1, 256)
    fe_w2_ref, fe_b2_ref,      # block-diag encoder layer 2: (256, 256), (1, 256)
    mix_w_ref, mix_b_ref,      # fused inv/fwd first layer:  (256, 256), (1, 256)
    act_w_ref,                 # action rows of fwd first layer: (action_dim, 128)
    inv_w2_ref, inv_b2_ref,    # inverse head: (128, action_dim), (1, action_dim)
    std_ref,                   # exp(logstd):  (1, action_dim)
    fwd_w2_ref, fwd_b2_ref,    # forward head: (128, 128), (1, 128)
    # batch-tiled outputs
    sample_out_ref,            # (tb, action_dim) f32
    pred_nsf_out_ref,          # (tb, 128) f32
    nsf_out_ref,               # (tb, 128) f32
):
    bf16 = jnp.bfloat16

    # ---- feature encoder on [state | next_state] with block-diagonal weights ----
    h = jnp.dot(x_ref[...], fe_w1_ref[...], preferred_element_type=jnp.float32) + fe_b1_ref[...]
    h = jnp.maximum(h, 0.0).astype(bf16)
    feats_f32 = jnp.maximum(
        jnp.dot(h, fe_w2_ref[...], preferred_element_type=jnp.float32) + fe_b2_ref[...],
        0.0,
    )                                                   # (tb, 256) = [sf | nsf]
    nsf_out_ref[...] = feats_f32[:, LAYER_SIZE:]

    feats = feats_f32.astype(bf16)

    # ---- fused inverse/forward first layer: one N=256 dot over [sf|nsf] ----
    mix = jnp.dot(feats, mix_w_ref[...], preferred_element_type=jnp.float32) + mix_b_ref[...]
    act_contrib = jnp.dot(action_ref[...], act_w_ref[...],
                          preferred_element_type=jnp.float32)       # (tb, 128)

    h_inv = jnp.maximum(mix[:, :LAYER_SIZE], 0.0).astype(bf16)
    h_fwd = jnp.maximum(mix[:, LAYER_SIZE:] + act_contrib, 0.0).astype(bf16)

    # ---- inverse head: Normal(mean, std).sample() via reparameterization ----
    mean = (jnp.dot(h_inv, inv_w2_ref[...], preferred_element_type=jnp.float32)
            + inv_b2_ref[...])
    sample_out_ref[...] = mean + std_ref[...] * eps_ref[...]

    # ---- forward head: predicted next-state features ----
    pred_nsf_out_ref[...] = (jnp.dot(h_fwd, fwd_w2_ref[...],
                                     preferred_element_type=jnp.float32)
                             + fwd_b2_ref[...])


# ---------------------------------------------------------------------------
# Parameter init / packing
# ---------------------------------------------------------------------------
def _linear_params(key, in_dim, out_dim, std=math.sqrt(2.0)):
    """Matches layer_init: orthogonal weight (gain=std), zero bias.

    Returns W transposed to [in_dim, out_dim] for x @ W use, bias as [1, out_dim].
    """
    w = jax.nn.initializers.orthogonal(scale=std)(key, (out_dim, in_dim), jnp.float32)
    b = jnp.zeros((1, out_dim), dtype=jnp.float32)
    return jnp.asarray(w).T, b


def init_icm_params(key, state_dim, action_dim):
    keys = jax.random.split(key, 6)
    fe_w1, fe_b1 = _linear_params(keys[0], state_dim, LAYER_SIZE)
    fe_w2, fe_b2 = _linear_params(keys[1], LAYER_SIZE, LAYER_SIZE)

    inv_w1, inv_b1 = _linear_params(keys[2], 2 * LAYER_SIZE, LAYER_SIZE)
    inv_w2, inv_b2 = _linear_params(keys[3], LAYER_SIZE, action_dim)

    fwd_w1, fwd_b1 = _linear_params(keys[4], LAYER_SIZE + action_dim, LAYER_SIZE)
    fwd_w2, fwd_b2 = _linear_params(keys[5], LAYER_SIZE, LAYER_SIZE)

    return {
        "fe_w1": fe_w1, "fe_b1": fe_b1, "fe_w2": fe_w2, "fe_b2": fe_b2,
        # split cat([sf, nsf]) weight into its two 128-row halves
        "inv_w1a": inv_w1[:LAYER_SIZE, :], "inv_w1b": inv_w1[LAYER_SIZE:, :],
        "inv_b1": inv_b1, "inv_w2": inv_w2, "inv_b2": inv_b2,
        "logstd": jnp.zeros((1, action_dim), dtype=jnp.float32),
        # split cat([sf, action]) weight into feature / action parts
        "fwd_w1a": fwd_w1[:LAYER_SIZE, :], "fwd_w1b": fwd_w1[LAYER_SIZE:, :],
        "fwd_b1": fwd_b1, "fwd_w2": fwd_w2, "fwd_b2": fwd_b2,
    }


def pack_icm_params(p):
    """Kernel-facing params: bf16 matmul weights (block-diagonal encoder, fused
    inverse/forward first layer), f32 biases, precomputed std."""
    bf = jnp.bfloat16
    f32 = jnp.float32
    sd = p["fe_w1"].shape[0]
    L = LAYER_SIZE

    def z(r, c):
        return jnp.zeros((r, c), f32)

    fe_w1_blk = jnp.block([[p["fe_w1"], z(sd, L)],
                           [z(sd, L), p["fe_w1"]]]).astype(bf)          # (2*sd, 256)
    fe_b1_blk = jnp.concatenate([p["fe_b1"], p["fe_b1"]], axis=1)        # (1, 256)
    fe_w2_blk = jnp.block([[p["fe_w2"], z(L, L)],
                           [z(L, L), p["fe_w2"]]]).astype(bf)            # (256, 256)
    fe_b2_blk = jnp.concatenate([p["fe_b2"], p["fe_b2"]], axis=1)        # (1, 256)

    # [sf | nsf] @ [[inv_w1a, fwd_w1a], [inv_w1b, 0]] -> [h_inv_pre | h_fwd_pre]
    mix_w = jnp.block([[p["inv_w1a"], p["fwd_w1a"]],
                       [p["inv_w1b"], z(L, L)]]).astype(bf)              # (256, 256)
    mix_b = jnp.concatenate([p["inv_b1"], p["fwd_b1"]], axis=1)          # (1, 256)

    return {
        "fe_w1": fe_w1_blk, "fe_b1": fe_b1_blk,
        "fe_w2": fe_w2_blk, "fe_b2": fe_b2_blk,
        "mix_w": mix_w, "mix_b": mix_b,
        "act_w": p["fwd_w1b"].astype(bf),          # (action_dim, 128)
        "inv_w2": p["inv_w2"].astype(bf),          # (128, action_dim)
        "inv_b2": p["inv_b2"],                     # (1, action_dim)
        "std": jnp.exp(p["logstd"]),               # (1, action_dim)
        "fwd_w2": p["fwd_w2"].astype(bf),          # (128, 128)
        "fwd_b2": p["fwd_b2"],                     # (1, 128)
    }


# ---------------------------------------------------------------------------
# Wrapper
# ---------------------------------------------------------------------------
def _ceil_div(a, b):
    return -(-a // b)


def _choose_tile(batch, block_b):
    """Batch tile: multiple of 8 sublanes, sized from B so no padded tail tile is
    processed when avoidable, with >=2 grid steps (both v7x TensorCores busy)."""
    if batch <= 8:
        return 8
    n_tiles = max(2, _ceil_div(batch, block_b))
    return _ceil_div(_ceil_div(batch, n_tiles), 8) * 8


def _pad_rows(x, rows):
    if x.shape[0] == rows:
        return x
    return jnp.pad(x, ((0, rows - x.shape[0]), (0, 0)))


def icm_forward(state, next_state, action, eps, params, *, block_b=512):
    B, state_dim = state.shape
    action_dim = action.shape[1]
    bf = jnp.bfloat16

    packed = pack_icm_params(params)

    tb = _choose_tile(B, block_b)
    Bp = _ceil_div(B, tb) * tb
    grid = (Bp // tb,)

    # Pre-stack [state | next_state] along lanes; inputs to the kernel at natural
    # widths (no lane padding of action/eps in HBM).
    x = _pad_rows(jnp.concatenate([state, next_state], axis=1).astype(bf), Bp)
    action_b = _pad_rows(action.astype(bf), Bp)
    eps_p = _pad_rows(eps.astype(jnp.float32), Bp)

    def batch_spec(width):
        return pl.BlockSpec((tb, width), lambda i: (i, 0))

    def resident_spec(arr):
        return pl.BlockSpec(arr.shape, lambda i: (0, 0))

    weight_order = (
        "fe_w1", "fe_b1", "fe_w2", "fe_b2",
        "mix_w", "mix_b", "act_w",
        "inv_w2", "inv_b2", "std",
        "fwd_w2", "fwd_b2",
    )
    weights = tuple(packed[k] for k in weight_order)

    in_specs = [
        batch_spec(2 * state_dim),   # stacked states
        batch_spec(action_dim),      # action (natural width)
        batch_spec(action_dim),      # eps (natural width)
    ] + [resident_spec(w) for w in weights]

    out_shape = (
        jax.ShapeDtypeStruct((Bp, action_dim), jnp.float32),   # sampled action
        jax.ShapeDtypeStruct((Bp, LAYER_SIZE), jnp.float32),   # predicted next-state features
        jax.ShapeDtypeStruct((Bp, LAYER_SIZE), jnp.float32),   # next-state features
    )
    out_specs = (
        batch_spec(action_dim),
        batch_spec(LAYER_SIZE),
        batch_spec(LAYER_SIZE),
    )

    sample_p, pred_nsf_p, nsf_p = pl.pallas_call(
        icm_kernel,
        out_shape=out_shape,
        grid=grid,
        in_specs=in_specs,
        out_specs=out_specs,
        compiler_params=pltpu.CompilerParams(
            dimension_semantics=("parallel",),
        ),
    )(x, action_b, eps_p, *weights)

    if Bp != B:
        return sample_p[:B], pred_nsf_p[:B], nsf_p[:B]
    return sample_p, pred_nsf_p, nsf_p


# ---------------------------------------------------------------------------
# Pure-JAX reference (same bf16 matmul rounding as the kernel)
# ---------------------------------------------------------------------------
def icm_reference(state, next_state, action, eps, p):
    bf = jnp.bfloat16

    def dot(x, w):
        return jnp.dot(x.astype(bf), w.astype(bf), preferred_element_type=jnp.float32)

    def fe(x):
        h = jnp.maximum(dot(x, p["fe_w1"]) + p["fe_b1"], 0.0)
        return jnp.maximum(dot(h, p["fe_w2"]) + p["fe_b2"], 0.0)

    sf, nsf = fe(state), fe(next_state)
    h = jnp.maximum(dot(sf, p["inv_w1a"]) + dot(nsf, p["inv_w1b"]) + p["inv_b1"], 0.0)
    mean = dot(h, p["inv_w2"]) + p["inv_b2"]
    sample = mean + jnp.exp(p["logstd"]) * eps
    h2 = jnp.maximum(dot(sf, p["fwd_w1a"]) + dot(action, p["fwd_w1b"]) + p["fwd_b1"], 0.0)
    pred_nsf = dot(h2, p["fwd_w2"]) + p["fwd_b2"]
    return sample, pred_nsf, nsf


# ---------------------------------------------------------------------------
# Demo / sanity check
# ---------------------------------------------------------------------------
if __name__ == "__main__":
    # B=200 -> tb=104, grid=2 (exercises both the >=2-step grid and row padding)
    B, STATE_DIM, ACTION_DIM = 200, 16, 4

    key = jax.random.PRNGKey(0)
    k_state, k_next, k_action, k_eps, k_params = jax.random.split(key, 5)

    state = jax.random.normal(k_state, (B, STATE_DIM), dtype=jnp.float32)
    next_state = jax.random.normal(k_next, (B, STATE_DIM), dtype=jnp.float32)
    action = jax.random.normal(k_action, (B, ACTION_DIM), dtype=jnp.float32)
    # Standard-normal noise for the reparameterized Normal(mean, std).sample().
    eps = jax.random.normal(k_eps, (B, ACTION_DIM), dtype=jnp.float32)

    params = init_icm_params(k_params, STATE_DIM, ACTION_DIM)

    sample, pred_nsf, nsf = jax.block_until_ready(
        icm_forward(state, next_state, action, eps, params, block_b=512)
    )

    assert sample.shape == (B, ACTION_DIM)
    assert pred_nsf.shape == (B, LAYER_SIZE)
    assert nsf.shape == (B, LAYER_SIZE)

    ref_sample, ref_pred_nsf, ref_nsf = icm_reference(state, next_state, action, eps, params)
    assert jnp.allclose(sample, ref_sample, atol=1e-2, rtol=1e-2)
    assert jnp.allclose(pred_nsf, ref_pred_nsf, atol=1e-2, rtol=1e-2)
    assert jnp.allclose(nsf, ref_nsf, atol=1e-2, rtol=1e-2)

    print("KERNEL_OK")
</pallas_src>

<mosaic_0001>
module attributes {stable_mosaic.version = 11 : i64} {
  func.func @icm_kernel(%arg0: i32, %arg1: memref<104x32xbf16, #tpu.memory_space<vmem>>, %arg2: memref<104x4xbf16, #tpu.memory_space<vmem>>, %arg3: memref<104x4xf32, #tpu.memory_space<vmem>>, %arg4: memref<32x256xbf16, #tpu.memory_space<vmem>>, %arg5: memref<1x256xf32, #tpu.memory_space<vmem>>, %arg6: memref<256x256xbf16, #tpu.memory_space<vmem>>, %arg7: memref<1x256xf32, #tpu.memory_space<vmem>>, %arg8: memref<256x256xbf16, #tpu.memory_space<vmem>>, %arg9: memref<1x256xf32, #tpu.memory_space<vmem>>, %arg10: memref<4x128xbf16, #tpu.memory_space<vmem>>, %arg11: memref<128x4xbf16, #tpu.memory_space<vmem>>, %arg12: memref<1x4xf32, #tpu.memory_space<vmem>>, %arg13: memref<1x4xf32, #tpu.memory_space<vmem>>, %arg14: memref<128x128xbf16, #tpu.memory_space<vmem>>, %arg15: memref<1x128xf32, #tpu.memory_space<vmem>>, %arg16: memref<104x4xf32, #tpu.memory_space<vmem>>, %arg17: memref<104x128xf32, #tpu.memory_space<vmem>>, %arg18: memref<104x128xf32, #tpu.memory_space<vmem>>) attributes {dimension_semantics = [#tpu.dimension_semantics<parallel>], iteration_bounds = array<i64: 2>, scalar_prefetch = 0 : i64, scratch_operands = 0 : i64, tpu.core_type = #tpu.core_type<tc>, window_params = [{transform_indices = @transform_0, window_bounds = array<i64: 104, 32>}, {transform_indices = @transform_1, window_bounds = array<i64: 104, 4>}, {transform_indices = @transform_2, window_bounds = array<i64: 104, 4>}, {pipeline_mode = #tpu.pipeline_mode<synchronous>, transform_indices = @transform_3, window_bounds = array<i64: 32, 256>}, {pipeline_mode = #tpu.pipeline_mode<synchronous>, transform_indices = @transform_4, window_bounds = array<i64: 1, 256>}, {pipeline_mode = #tpu.pipeline_mode<synchronous>, transform_indices = @transform_5, window_bounds = array<i64: 256, 256>}, {pipeline_mode = #tpu.pipeline_mode<synchronous>, transform_indices = @transform_6, window_bounds = array<i64: 1, 256>}, {pipeline_mode = #tpu.pipeline_mode<synchronous>, transform_indices = @transform_7, window_bounds = array<i64: 256, 256>}, {pipeline_mode = #tpu.pipeline_mode<synchronous>, transform_indices = @transform_8, window_bounds = array<i64: 1, 256>}, {pipeline_mode = #tpu.pipeline_mode<synchronous>, transform_indices = @transform_9, window_bounds = array<i64: 4, 128>}, {pipeline_mode = #tpu.pipeline_mode<synchronous>, transform_indices = @transform_10, window_bounds = array<i64: 128, 4>}, {pipeline_mode = #tpu.pipeline_mode<synchronous>, transform_indices = @transform_11, window_bounds = array<i64: 1, 4>}, {pipeline_mode = #tpu.pipeline_mode<synchronous>, transform_indices = @transform_12, window_bounds = array<i64: 1, 4>}, {pipeline_mode = #tpu.pipeline_mode<synchronous>, transform_indices = @transform_13, window_bounds = array<i64: 128, 128>}, {pipeline_mode = #tpu.pipeline_mode<synchronous>, transform_indices = @transform_14, window_bounds = array<i64: 1, 128>}, {transform_indices = @transform_15, window_bounds = array<i64: 104, 4>}, {transform_indices = @transform_16, window_bounds = array<i64: 104, 128>}, {transform_indices = @transform_17, window_bounds = array<i64: 104, 128>}]} {
    %c0 = arith.constant 0 : index
    %c0_0 = arith.constant 0 : index
    %0 = vector.load %arg1[%c0, %c0_0] : memref<104x32xbf16, #tpu.memory_space<vmem>>, vector<104x32xbf16>
    %c0_1 = arith.constant 0 : index
    %c0_2 = arith.constant 0 : index
    %1 = vector.load %arg4[%c0_1, %c0_2] : memref<32x256xbf16, #tpu.memory_space<vmem>>, vector<32x256xbf16>
    %cst = arith.constant dense<0.000000e+00> : vector<104x256xf32>
    %2 = tpu.matmul %0, %1, %cst {dimension_numbers = #tpu.dot_dimension_numbers<[1], [0], [0], [1], [0, 0, 1, 1], [], []>} : vector<104x32xbf16>, vector<32x256xbf16>, vector<104x256xf32> -> vector<104x256xf32>
    %c0_3 = arith.constant 0 : index
    %c0_4 = arith.constant 0 : index
    %3 = vector.load %arg5[%c0_3, %c0_4] : memref<1x256xf32, #tpu.memory_space<vmem>>, vector<1x256xf32>
    %4 = vector.broadcast %3 : vector<1x256xf32> to vector<104x256xf32>
    %5 = arith.addf %2, %4 : vector<104x256xf32>
    %cst_5 = arith.constant 0.000000e+00 : f32
    %6 = vector.broadcast %cst_5 : f32 to vector<104x256xf32>
    %7 = arith.maximumf %5, %6 : vector<104x256xf32>
    %8 = arith.truncf %7 : vector<104x256xf32> to vector<104x256xbf16>
    %c0_6 = arith.constant 0 : index
    %c0_7 = arith.constant 0 : index
    %9 = vector.load %arg6[%c0_6, %c0_7] : memref<256x256xbf16, #tpu.memory_space<vmem>>, vector<256x256xbf16>
    %cst_8 = arith.constant dense<0.000000e+00> : vector<104x256xf32>
    %10 = tpu.matmul %8, %9, %cst_8 {dimension_numbers = #tpu.dot_dimension_numbers<[1], [0], [0], [1], [0, 0, 1, 1], [], []>} : vector<104x256xbf16>, vector<256x256xbf16>, vector<104x256xf32> -> vector<104x256xf32>
    %c0_9 = arith.constant 0 : index
    %c0_10 = arith.constant 0 : index
    %11 = vector.load %arg7[%c0_9, %c0_10] : memref<1x256xf32, #tpu.memory_space<vmem>>, vector<1x256xf32>
    %12 = vector.broadcast %11 : vector<1x256xf32> to vector<104x256xf32>
    %13 = arith.addf %10, %12 : vector<104x256xf32>
    %cst_11 = arith.constant 0.000000e+00 : f32
    %14 = vector.broadcast %cst_11 : f32 to vector<104x256xf32>
    %15 = arith.maximumf %13, %14 : vector<104x256xf32>
    %16 = vector.extract_strided_slice %15 {offsets = [0, 128], sizes = [104, 128], strides = [1, 1]} : vector<104x256xf32> to vector<104x128xf32>
    %c0_12 = arith.constant 0 : index
    %c0_13 = arith.constant 0 : index
    %17 = vector.load %arg18[%c0_12, %c0_13] : memref<104x128xf32, #tpu.memory_space<vmem>>, vector<104x128xf32>
    tpu.vector_store %arg18[%c0_12, %c0_13], %16 {strides = array<i32>} : memref<104x128xf32, #tpu.memory_space<vmem>>, vector<104x128xf32>,
    %18 = arith.truncf %15 : vector<104x256xf32> to vector<104x256xbf16>
    %c0_14 = arith.constant 0 : index
    %c0_15 = arith.constant 0 : index
    %19 = vector.load %arg8[%c0_14, %c0_15] : memref<256x256xbf16, #tpu.memory_space<vmem>>, vector<256x256xbf16>
    %cst_16 = arith.constant dense<0.000000e+00> : vector<104x256xf32>
    %20 = tpu.matmul %18, %19, %cst_16 {dimension_numbers = #tpu.dot_dimension_numbers<[1], [0], [0], [1], [0, 0, 1, 1], [], []>} : vector<104x256xbf16>, vector<256x256xbf16>, vector<104x256xf32> -> vector<104x256xf32>
    %c0_17 = arith.constant 0 : index
    %c0_18 = arith.constant 0 : index
    %21 = vector.load %arg9[%c0_17, %c0_18] : memref<1x256xf32, #tpu.memory_space<vmem>>, vector<1x256xf32>
    %22 = vector.broadcast %21 : vector<1x256xf32> to vector<104x256xf32>
    %23 = arith.addf %20, %22 : vector<104x256xf32>
    %c0_19 = arith.constant 0 : index
    %c0_20 = arith.constant 0 : index
    %24 = vector.load %arg2[%c0_19, %c0_20] : memref<104x4xbf16, #tpu.memory_space<vmem>>, vector<104x4xbf16>
    %c0_21 = arith.constant 0 : index
    %c0_22 = arith.constant 0 : index
    %25 = vector.load %arg10[%c0_21, %c0_22] : memref<4x128xbf16, #tpu.memory_space<vmem>>, vector<4x128xbf16>
    %cst_23 = arith.constant dense<0.000000e+00> : vector<104x128xf32>
    %26 = tpu.matmul %24, %25, %cst_23 {dimension_numbers = #tpu.dot_dimension_numbers<[1], [0], [0], [1], [0, 0, 1, 1], [], []>} : vector<104x4xbf16>, vector<4x128xbf16>, vector<104x128xf32> -> vector<104x128xf32>
    %27 = vector.extract_strided_slice %23 {offsets = [0, 0], sizes = [104, 128], strides = [1, 1]} : vector<104x256xf32> to vector<104x128xf32>
    %cst_24 = arith.constant 0.000000e+00 : f32
    %28 = vector.broadcast %cst_24 : f32 to vector<104x128xf32>
    %29 = arith.maximumf %27, %28 : vector<104x128xf32>
    %30 = arith.truncf %29 : vector<104x128xf32> to vector<104x128xbf16>
    %31 = vector.extract_strided_slice %23 {offsets = [0, 128], sizes = [104, 128], strides = [1, 1]} : vector<104x256xf32> to vector<104x128xf32>
    %32 = arith.addf %31, %26 : vector<104x128xf32>
    %cst_25 = arith.constant 0.000000e+00 : f32
    %33 = vector.broadcast %cst_25 : f32 to vector<104x128xf32>
    %34 = arith.maximumf %32, %33 : vector<104x128xf32>
    %35 = arith.truncf %34 : vector<104x128xf32> to vector<104x128xbf16>
    %c0_26 = arith.constant 0 : index
    %c0_27 = arith.constant 0 : index
    %36 = vector.load %arg11[%c0_26, %c0_27] : memref<128x4xbf16, #tpu.memory_space<vmem>>, vector<128x4xbf16>
    %cst_28 = arith.constant dense<0.000000e+00> : vector<104x4xf32>
    %37 = tpu.matmul %30, %36, %cst_28 {dimension_numbers = #tpu.dot_dimension_numbers<[1], [0], [0], [1], [0, 0, 1, 1], [], []>} : vector<104x128xbf16>, vector<128x4xbf16>, vector<104x4xf32> -> vector<104x4xf32>
    %c0_29 = arith.constant 0 : index
    %c0_30 = arith.constant 0 : index
    %38 = vector.load %arg12[%c0_29, %c0_30] : memref<1x4xf32, #tpu.memory_space<vmem>>, vector<1x4xf32>
    %39 = vector.broadcast %38 : vector<1x4xf32> to vector<104x4xf32>
    %40 = arith.addf %37, %39 : vector<104x4xf32>
    %c0_31 = arith.constant 0 : index
    %c0_32 = arith.constant 0 : index
    %41 = vector.load %arg13[%c0_31, %c0_32] : memref<1x4xf32, #tpu.memory_space<vmem>>, vector<1x4xf32>
    %c0_33 = arith.constant 0 : index
    %c0_34 = arith.constant 0 : index
    %42 = vector.load %arg3[%c0_33, %c0_34] : memref<104x4xf32, #tpu.memory_space<vmem>>, vector<104x4xf32>
    %43 = vector.broadcast %41 : vector<1x4xf32> to vector<104x4xf32>
    %44 = arith.mulf %43, %42 : vector<104x4xf32>
    %45 = arith.addf %40, %44 : vector<104x4xf32>
    %c0_35 = arith.constant 0 : index
    %c0_36 = arith.constant 0 : index
    %46 = vector.load %arg16[%c0_35, %c0_36] : memref<104x4xf32, #tpu.memory_space<vmem>>, vector<104x4xf32>
    tpu.vector_store %arg16[%c0_35, %c0_36], %45 {strides = array<i32>} : memref<104x4xf32, #tpu.memory_space<vmem>>, vector<104x4xf32>,
    %c0_37 = arith.constant 0 : index
    %c0_38 = arith.constant 0 : index
    %47 = vector.load %arg14[%c0_37, %c0_38] : memref<128x128xbf16, #tpu.memory_space<vmem>>, vector<128x128xbf16>
    %cst_39 = arith.constant dense<0.000000e+00> : vector<104x128xf32>
    %48 = tpu.matmul %35, %47, %cst_39 {dimension_numbers = #tpu.dot_dimension_numbers<[1], [0], [0], [1], [0, 0, 1, 1], [], []>} : vector<104x128xbf16>, vector<128x128xbf16>, vector<104x128xf32> -> vector<104x128xf32>
    %c0_40 = arith.constant 0 : index
    %c0_41 = arith.constant 0 : index
    %49 = vector.load %arg15[%c0_40, %c0_41] : memref<1x128xf32, #tpu.memory_space<vmem>>, vector<1x128xf32>
    %50 = vector.broadcast %49 : vector<1x128xf32> to vector<104x128xf32>
    %51 = arith.addf %48, %50 : vector<104x128xf32>
    %c0_42 = arith.constant 0 : index
    %c0_43 = arith.constant 0 : index
    %52 = vector.load %arg17[%c0_42, %c0_43] : memref<104x128xf32, #tpu.memory_space<vmem>>, vector<104x128xf32>
    tpu.vector_store %arg17[%c0_42, %c0_43], %51 {strides = array<i32>} : memref<104x128xf32, #tpu.memory_space<vmem>>, vector<104x128xf32>,
    return
  }
  func.func @transform_0(%arg0: i32) -> (i32, i32) {
    %c0_i32 = arith.constant 0 : i32
    %c0_i32_0 = arith.constant 0 : i32
    return %arg0, %c0_i32 : i32, i32
  }
  func.func @transform_1(%arg0: i32) -> (i32, i32) {
    %c0_i32 = arith.constant 0 : i32
    %c0_i32_0 = arith.constant 0 : i32
    return %arg0, %c0_i32 : i32, i32
  }
  func.func @transform_2(%arg0: i32) -> (i32, i32) {
    %c0_i32 = arith.constant 0 : i32
    %c0_i32_0 = arith.constant 0 : i32
    return %arg0, %c0_i32 : i32, i32
  }
  func.func @transform_3(%arg0: i32) -> (i32, i32) {
    %c0_i32 = arith.constant 0 : i32
    %c0_i32_0 = arith.constant 0 : i32
    %c0_i32_1 = arith.constant 0 : i32
    return %c0_i32, %c0_i32_0 : i32, i32
  }
  func.func @transform_4(%arg0: i32) -> (i32, i32) {
    %c0_i32 = arith.constant 0 : i32
    %c0_i32_0 = arith.constant 0 : i32
    %c0_i32_1 = arith.constant 0 : i32
    return %c0_i32, %c0_i32_0 : i32, i32
  }
  func.func @transform_5(%arg0: i32) -> (i32, i32) {
    %c0_i32 = arith.constant 0 : i32
    %c0_i32_0 = arith.constant 0 : i32
    %c0_i32_1 = arith.constant 0 : i32
    return %c0_i32, %c0_i32_0 : i32, i32
  }
  func.func @transform_6(%arg0: i32) -> (i32, i32) {
    %c0_i32 = arith.constant 0 : i32
    %c0_i32_0 = arith.constant 0 : i32
    %c0_i32_1 = arith.constant 0 : i32
    return %c0_i32, %c0_i32_0 : i32, i32
  }
  func.func @transform_7(%arg0: i32) -> (i32, i32) {
    %c0_i32 = arith.constant 0 : i32
    %c0_i32_0 = arith.constant 0 : i32
    %c0_i32_1 = arith.constant 0 : i32
    return %c0_i32, %c0_i32_0 : i32, i32
  }
  func.func @transform_8(%arg0: i32) -> (i32, i32) {
    %c0_i32 = arith.constant 0 : i32
    %c0_i32_0 = arith.constant 0 : i32
    %c0_i32_1 = arith.constant 0 : i32
    return %c0_i32, %c0_i32_0 : i32, i32
  }
  func.func @transform_9(%arg0: i32) -> (i32, i32) {
    %c0_i32 = arith.constant 0 : i32
    %c0_i32_0 = arith.constant 0 : i32
    %c0_i32_1 = arith.constant 0 : i32
    return %c0_i32, %c0_i32_0 : i32, i32
  }
  func.func @transform_10(%arg0: i32) -> (i32, i32) {
    %c0_i32 = arith.constant 0 : i32
    %c0_i32_0 = arith.constant 0 : i32
    %c0_i32_1 = arith.constant 0 : i32
    return %c0_i32, %c0_i32_0 : i32, i32
  }
  func.func @transform_11(%arg0: i32) -> (i32, i32) {
    %c0_i32 = arith.constant 0 : i32
    %c0_i32_0 = arith.constant 0 : i32
    %c0_i32_1 = arith.constant 0 : i32
    return %c0_i32, %c0_i32_0 : i32, i32
  }
  func.func @transform_12(%arg0: i32) -> (i32, i32) {
    %c0_i32 = arith.constant 0 : i32
    %c0_i32_0 = arith.constant 0 : i32
    %c0_i32_1 = arith.constant 0 : i32
    return %c0_i32, %c0_i32_0 : i32, i32
  }
  func.func @transform_13(%arg0: i32) -> (i32, i32) {
    %c0_i32 = arith.constant 0 : i32
    %c0_i32_0 = arith.constant 0 : i32
    %c0_i32_1 = arith.constant 0 : i32
    return %c0_i32, %c0_i32_0 : i32, i32
  }
  func.func @transform_14(%arg0: i32) -> (i32, i32) {
    %c0_i32 = arith.constant 0 : i32
    %c0_i32_0 = arith.constant 0 : i32
    %c0_i32_1 = arith.constant 0 : i32
    return %c0_i32, %c0_i32_0 : i32, i32
  }
  func.func @transform_15(%arg0: i32) -> (i32, i32) {
    %c0_i32 = arith.constant 0 : i32
    %c0_i32_0 = arith.constant 0 : i32
    return %arg0, %c0_i32 : i32, i32
  }
  func.func @transform_16(%arg0: i32) -> (i32, i32) {
    %c0_i32 = arith.constant 0 : i32
    %c0_i32_0 = arith.constant 0 : i32
    return %arg0, %c0_i32 : i32, i32
  }
  func.func @transform_17(%arg0: i32) -> (i32, i32) {
    %c0_i32 = arith.constant 0 : i32
    %c0_i32_0 = arith.constant 0 : i32
    return %arg0, %c0_i32 : i32, i32
  }
}

</mosaic_0001>

<bundles_post_ra>
// kernel: tpu_custom_call.1
= control target key start
LH: loop header
LB: loop body
LE: loop exit
PB: predicated region body
PF: predicated region fallthrough
CT: control target
= control target key end

     0   :  { %s4028_s0 = inlined_call_operand.vmem [shape: bf16[208,32], index: 0, kind: input, shape index: {}]   ;;  %s4029_s1 = inlined_call_operand.vmem [shape: bf16[208,4], index: 1, kind: input, shape index: {}]   ;;  %s4030_s2 = inlined_call_operand.vmem [shape: f32[208,4], index: 2, kind: input, shape index: {}]   ;;  %s4031_s3 = inlined_call_operand.hbm [shape: bf16[32,256], index: 3, kind: input, shape index: {}]   ;;  %s4032_s4 = inlined_call_operand.vmem [shape: f32[1,256], index: 4, kind: input, shape index: {}]   ;;  %s4033_s5 = inlined_call_operand.vmem [shape: bf16[256,256], index: 5, kind: input, shape index: {}]   ;;  %s4034_s6 = inlined_call_operand.vmem [shape: f32[1,256], index: 6, kind: input, shape index: {}]   ;;  %s4035_s7 = inlined_call_operand.vmem [shape: bf16[256,256], index: 7, kind: input, shape index: {}]   ;;  %s4036_s8 = inlined_call_operand.vmem [shape: f32[1,256], index: 8, kind: input, shape index: {}]   ;;  %s4037_s9 = inlined_call_operand.vmem [shape: bf16[4,128], index: 9, kind: input, shape index: {}]   ;;  %s4038_s10 = inlined_call_operand.vmem [shape: bf16[128,4], index: 10, kind: input, shape index: {}]   ;;  %s4039_s11 = inlined_call_operand.vmem [shape: f32[1,4], index: 11, kind: input, shape index: {}]   ;;  %s4040_s12 = inlined_call_operand.vmem [shape: f32[1,4], index: 12, kind: input, shape index: {}]   ;;  %s4041_s13 = inlined_call_operand.hbm [shape: bf16[128,128], index: 13, kind: input, shape index: {}]   ;;  %s4042_s14 = inlined_call_operand.vmem [shape: f32[1,128], index: 14, kind: input, shape index: {}]   ;;  %s4043_s15 = inlined_call_operand.vmem [shape: f32[208,4], index: 15, kind: output, shape index: {0}]   ;;  %s4044_s16 = inlined_call_operand.hbm [shape: f32[208,128], index: 16, kind: output, shape index: {1}]   ;;  %s4045_s17 = inlined_call_operand.hbm [shape: f32[208,128], index: 17, kind: output, shape index: {2}]  }
   0x1   :  { %4058 = sst [smem:[#allocation20_spill]] %s4028_s0 }
   0x2   :  { %4059 = sst [smem:[#allocation21_spill]] %s4029_s1 }
   0x3   :  { %4060 = sst [smem:[#allocation22_spill]] %s4042_s14 }
   0x4   :  { %4061 = sst [smem:[#allocation23_spill]] %s4043_s15 }
   0x5   :  { %4062 = sst [smem:[#allocation24_spill]] %s4044_s16 }
   0x6   :  { %23 = vsyncpa [#allocation3], 0 }
   0x7   :  { %24 = vsyncpa [#allocation6], 0 }
   0x8   :  { %25 = vsyncpa [#allocation4], 0 }
   0x9   :  { %27 = vsyncpa [#allocation4 + $0x1], 0 }
   0xa   :  { %28 = vsyncpa [#allocation9], 0 }
   0xb   :  { %30 = vsyncpa [#allocation9 + $0x1], 0  ;;  %s3146_s24 = smov 0   ;;  %s3148_s25 = smov 0  }
   0xc   :  { %s3150_s26 = smov 0   ;;  %s3152_s27 = smov 0  }
   0xd LB: > { %4063 = sst [smem:[#allocation14_spill]] %s3029_s24  ;;  %s3167_s28 = sadd.s32 4294967295, %s3041_s27   ;;  %s3041_s27 = sphi %s3152_s27, %s4091_s27   ;;  %s3037_s26 = sphi %s3150_s26, %s4093_s26   ;;  %s3033_s25 = sphi %s3148_s25, %s4095_s25   ;;  %s3029_s24 = sphi %s3146_s24, %s4094_s24  }
   0xe   : > { %4064 = sst [smem:[#allocation15_spill]] %s3037_s26  ;;  %s2371_s29 = sadd.s32 4294967294, %s3041_s27  }
   0xf   : > { %4065 = sst [smem:[#allocation16_spill]] %s3041_s27  ;;  %s3171_s0 = sadd.s32 1, %s3041_s27  }
  0x10   : > { %4066 = sst [smem:[#allocation17_spill]] %s3171_s0  ;;  %s399_s30 = sadd.s32 1, %s3037_s26 }
  0x11   : > { %s396_s18 = ssub.s32 %s3041_s27, %s3171_s0  ;;  %p409_p0 = scmp.ne.s32.totalorder %s3037_s26, %s3033_s25 }
  0x12   : > { %p397_p1 = scmp.eq.s32.totalorder %s396_s18, 0  ;;  %p410_p2 = scmp.eq.s32.totalorder %s3167_s28, 1 }
  0x13   : > { %p415_p3 = scmp.ne.s32.totalorder %s3033_s25, %s3029_s24  ;;  %p416_p4 = scmp.eq.s32.totalorder %s2371_s29, 1 }
  0x14   : > { %s3182_s19 = scalar_select %p397_p1, %s3037_s26, %s399_s30  }
  0x15   : > { %p3184_p5 = por %p410_p2, %p409_p0  ;;  %p3188_p6 = por %p416_p4, %p415_p3 }
  0x16   : > { %4067 = sst [smem:[#allocation18_spill]] %s3182_s19  ;;  %p2372_p7 = scmp.ge.s32.totalorder %s3041_s27, 1 }
  0x17   : > { %s4068_s1 = scalar_select %p3184_p5, 1, 0 }
  0x18   : > { %s4069_s20 = scalar_select %p3188_p6, 1, 0 }
  0x19   : > { %p449_p8 = scmp.lt.s32.totalorder %s3041_s27, 3  ;;  %p4052_p9 = scmp.eq.s32.totalorder %s3167_s28, 0 }
  0x1a   : > { %4070 = sst [smem:[#allocation19_spill]] %s4069_s20  ;;  %s3043_s22 = smov [#allocation2]  }
  0x1b   : > { %p3195_p10 = pnand %p2372_p7, %p449_p8  ;;  %s461_s23 = sshll.u32 %s3043_s22, 4  ;;  %s462_s23 = int_to_ptr.vmem [resolvable:$true] %s461_s23 }
  0x1c   : > { %s3044_s30 = smov [#allocation5]   ;;  %s2883_s0 = scalar_lea.hbm %s4031_s3, 512 }
  0x1d   : > { %s4071_s21 = scalar_select %p3195_p10, 1, 0 }
  0x1e   : > { %p2689_p11 = pneg %p3195_p10  ;;  %s501_s18 = sshll.u32 %s3044_s30, 4  ;;  %s3207_s18 = int_to_ptr.vmem [resolvable:$true] %s501_s18 }
  0x1f   : > { %p2884_p13 = scmp.ne.s32.totalorder %s4031_s3, %s2883_s0  ;;  %p2890_p3 = scmp.lt.u32.totalorder %s2883_s0, %s4031_s3 }
  0x20   : > { %p3203_p12 = pnand %p4052_p9, %p2689_p11 }
  0x22   : > { %p2885_p0 = pneg %p3203_p12 }
  0x24   : > { %p2886_p1 = pnand %p2885_p0, %p2884_p13 }
  0x26   : > { %p2887_p2 = pneg %p2886_p1 }
  0x28   : > { %p2892_p4 = pnand %p2890_p3, %p2887_p2 }
  0x2a   : > { %2895 = shalt.err (!%p2892_p4)
}
  0x2b   : > { %s2896_s30 = scalar_lea.vmem %s462_s23, 512  ;;  %p2904_p9 = scmp.lt.s32.totalorder %s462_s23, %s462_s23 }
  0x2c   : > { %p2897_p7 = scmp.ne.s32.totalorder %s462_s23, %s2896_s30  ;;  %p2905_p6 = scmp.lt.s32.totalorder %s2896_s30, %s2896_s30 }
  0x2e   : > { %p2899_p8 = pnand %p2897_p7, %p2885_p0  ;;  %p2906_p5 = por %p2905_p6, %p2904_p9 }
  0x30   : > { %p2900_p11 = pneg %p2899_p8 }
  0x32   : > { %p2907_p10 = pnand %p2906_p5, %p2900_p11 }
  0x34   : > { %2910 = shalt.err (!%p2907_p10)
}
  0x35   : > { %s3045_s26 = smov 128   ;;  %s3046_s19 = smov 8  }
  0x36   : > { %2692 = dma.hbm_to_vmem [thread:$0]  (!%p3203_p12), %s4031_s3, 512, %s462_s23, [#allocation3], %s3045_s26, %s3045_s26, %s3046_s19  }
  0x37   : > { %s2911_s22 = scalar_lea.hbm %s4041_s13, 1024 }
  0x38   : > { %p2912_p13 = scmp.ne.s32.totalorder %s4041_s13, %s2911_s22  ;;  %p2918_p9 = scmp.lt.u32.totalorder %s2911_s22, %s4041_s13 }
  0x3a   : > { %p2914_p5 = pnand %p2912_p13, %p2885_p0 }
  0x3c   : > { %p2915_p6 = pneg %p2914_p5 }
  0x3e   : > { %p2920_p10 = pnand %p2918_p9, %p2915_p6 }
  0x40   : > { %2923 = shalt.err (!%p2920_p10)
}
  0x41   : > { %s2924_s23 = scalar_lea.vmem %s3207_s18, 1024  ;;  %p2932_p4 = scmp.lt.s32.totalorder %s3207_s18, %s3207_s18 }
  0x42   : > { %p2925_p1 = scmp.ne.s32.totalorder %s3207_s18, %s2924_s23  ;;  %p2933_p7 = scmp.lt.s32.totalorder %s2924_s23, %s2924_s23 }
  0x44   : > { %p2927_p2 = pnand %p2925_p1, %p2885_p0  ;;  %p2934_p8 = por %p2933_p7, %p2932_p4 }
  0x46   : > { %p2928_p3 = pneg %p2927_p2 }
  0x48   : > { %p2935_p11 = pnand %p2934_p8, %p2928_p3 }
  0x4a   : > { %2938 = shalt.err (!%p2935_p11)
}
  0x4b   : > { %s3047_s14 = smov 64   ;;  %s3048_s15 = smov 4  }
  0x4c   : > { %2695 = dma.hbm_to_vmem [thread:$0]  (!%p3203_p12), %s4041_s13, 1024, %s3207_s18, [#allocation6], %s3047_s14, %s3047_s14, %s3048_s15  }
  0x4d   : > { %p4073_p13 = scmp.ne.s32.totalorder %s4071_s21, 0 }
  0x4e   : > { %p4074_p0 = scmp.eq.s32.totalorder (!%p4073_p13), %s3167_s28, 0 }
  0x4f   : > { %547 = sbr.rel (%p4073_p13) target bundleno = 1065 (0x429), region = 80 }
  0x56   : > { %3012 = dma.done.wait (%p4074_p0), [#allocation3], 512   ;;  %p4075_p5 = pmov %p4074_p0 }
  0x57   : > { %p4076_p6 = pmov %p4074_p0 }
  0x58   : > { %3014 = vsyncadd (%p4075_p5), [#allocation3], 4294966784 }
  0x59   : > { %3016 = dma.done.wait (%p4076_p6), [#allocation6], 1024   ;;  %p4077_p9 = pmov %p4074_p0 }
  0x5a   : > { %s623_s29 = smul.u32 13, %s3167_s28  ;;  %v3049_v0 = vmov 0   ;;  %v2751_v1 = vld [vmem:[#allocation2 + $0x4] ss:$8 sps:$4 sm:$0xff]   ;;  %v2753_v2 = vld [vmem:[#allocation2] ss:$8 sps:$4 sm:$0xff]  }
  0x5b   : > { %3018 = vsyncadd (%p4077_p9), [#allocation6], 4294966272  ;;  %786 = vmatprep.mubr.bf16.mxu0 %v3049_v0  ;;  %s4078_s24 = sld [smem:[#allocation20_spill]]  ;;  %754 = vmatprep.subr.bf16.mxu0 %v2751_v1  ;;  %v2754_v3 = vld [vmem:[#allocation2 + $0x14] ss:$8 sps:$4 sm:$0xff]   ;;  %vm732_vm0 = vcmask 261120  }
  0x5c   : > { %p624_p12 = scmp.lt.s32.totalorder %s623_s29, 25  ;;  %755 = vmatpush1.bf16.msra.mxu0 %v2753_v2  ;;  %v2756_v4 = vld [vmem:[#allocation2 + $0x10] ss:$8 sps:$4 sm:$0xff]   ;;  %v2764_v6 = vld [vmem:[%s4033_s5 + $0x4] ss:$8 sps:$4 sm:$0xff]   ;;  %s4079_s0 = sld [smem:[#allocation21_spill]] }
  0x5d   : > { %756 = vmatprep.subr.bf16.mxu0 %v2754_v3  ;;  %v2766_v7 = vld [vmem:[%s4033_s5] ss:$8 sps:$4 sm:$0xff]   ;;  %v2767_v8 = vld [vmem:[%s4033_s5 + $0x14] ss:$8 sps:$4 sm:$0xff]   ;;  %1099 = vmatprep.subr.bf16.mxu1 %v2764_v6  ;;  %v2769_v9 = vld [vmem:[%s4033_s5 + $0x10] ss:$8 sps:$4 sm:$0xff]  }
  0x5e   : > { %s4097_s29 = smov (!%p624_p12, %s623_s29), 25  ;;  %1100 = vmatpush1.bf16.msra.mxu1 %v2766_v7  ;;  %v2770_v11 = vld [vmem:[%s4033_s5 + $0x24] ss:$8 sps:$4 sm:$0xff]   ;;  %v2772_v12 = vld [vmem:[%s4033_s5 + $0x20] ss:$8 sps:$4 sm:$0xff]   ;;  %v3050_v50 = vmov 0.0  }
  0x5f   : > { %s2379_s21 = sshll.u32 %s4097_s29, 2  ;;  %1101 = vmatprep.subr.bf16.mxu1 %v2767_v8  ;;  %v2773_v13 = vld [vmem:[%s4033_s5 + $0x34] ss:$8 sps:$4 sm:$0xff]   ;;  %v2775_v14 = vld [vmem:[%s4033_s5 + $0x30] ss:$8 sps:$4 sm:$0xff]   ;;  %vm1627_vm1 = vcmask 1041408  }
  0x60   : > { %757 = vmatpush1.bf16.msra.mxu0 %v2756_v4  ;;  %v2776_v16 = vld [vmem:[%s4033_s5 + $0x44] ss:$8 sps:$4 sm:$0xff]   ;;  %v2778_v17 = vld [vmem:[%s4033_s5 + $0x40] ss:$8 sps:$4 sm:$0xff]   ;;  %v2779_v18 = vld [vmem:[%s4033_s5 + $0x54] ss:$8 sps:$4 sm:$0xff]  }
  0x61   : > { %s3276_s27 = scalar_lea.vmem %s4078_s24, %s2379_s21  ;;  %v2781_v19 = vld [vmem:[%s4033_s5 + $0x50] ss:$8 sps:$4 sm:$0xff]   ;;  %v2782_v21 = vld [vmem:[%s4033_s5 + $0x64] ss:$8 sps:$4 sm:$0xff]   ;;  %v2784_v22 = vld [vmem:[%s4033_s5 + $0x60] ss:$8 sps:$4 sm:$0xff]  }
  0x62   : > { %v2757_v5 = vld [vmem:[%s3276_s27] sm:$0xff]   ;;  %v2758_v10 = vld [vmem:[%s3276_s27 + $0x8] sm:$0xff]   ;;  %1102 = vmatpush1.bf16.msra.mxu1 %v2769_v9  ;;  %v2759_v15 = vld [vmem:[%s3276_s27 + $0x10] sm:$0xff]   ;;  %s3347_s20 = scalar_lea.vmem %s4079_s0, %s2379_s21  ;;  %v669_v9 = vlaneseq  ;;  %vm3051_vm2 = vmmov 0   ;;  %vm1605_vm3 = vcmask 31744   ;;  %s3576_s19 = sand.u32 1, %s3033_s25  }
  0x63   : > { %2394 = vmatmul.mubr.msk.bf16.vlgmr.msra.gmra.mrb[0].mxu0 %vm732_vm0, %v2757_v5  ;;  %1103 = vmatprep.subr.bf16.mxu1 %v2770_v11  ;;  %v2760_v20 = vld [vmem:[%s3276_s27 + $0x18] sm:$0xff]   ;;  %v2761_v25 = vld [vmem:[%s3276_s27 + $0x20] sm:$0xff]   ;;  %v2762_v30 = vld [vmem:[%s3276_s27 + $0x28] sm:$0xff]   ;;  %s4056_s21 = smul.u32 1664, %s3167_s28  ;;  %s2173_s22 = scalar_lea.sflag [#allocation9], %s3576_s19 }
  0x64   : > { %796 = vmatprep.mubr.bf16.mxu0 %v3049_v0  ;;  %v2785_v23 = vld [vmem:[%s4033_s5 + $0x74] ss:$8 sps:$4 sm:$0xff]   ;;  %v2787_v24 = vld [vmem:[%s4033_s5 + $0x70] ss:$8 sps:$4 sm:$0xff]   ;;  %v2788_v26 = vld [vmem:[%s4033_s5 + $0x84] ss:$8 sps:$4 sm:$0xff]  }
  0x65   : > { %v2790_v27 = vld [vmem:[%s4033_s5 + $0x80] ss:$8 sps:$4 sm:$0xff]   ;;  %v2791_v28 = vld [vmem:[%s4033_s5 + $0x94] ss:$8 sps:$4 sm:$0xff]   ;;  %v2793_v29 = vld [vmem:[%s4033_s5 + $0x90] ss:$8 sps:$4 sm:$0xff]   ;;  %s3822_s0 = scalar_lea.hbm %s4045_s17, %s4056_s21 }
  0x66   : > { %1104 = vmatpush1.bf16.msra.mxu1 %v2772_v12  ;;  %v2794_v31 = vld [vmem:[%s4033_s5 + $0xa4] ss:$8 sps:$4 sm:$0xff]   ;;  %v2796_v32 = vld [vmem:[%s4033_s5 + $0xa0] ss:$8 sps:$4 sm:$0xff]   ;;  %v2797_v33 = vld [vmem:[%s4033_s5 + $0xb4] ss:$8 sps:$4 sm:$0xff]  }
  0x67   : > { %1105 = vmatprep.subr.bf16.mxu1 %v2773_v13  ;;  %v2799_v34 = vld [vmem:[%s4033_s5 + $0xb0] ss:$8 sps:$4 sm:$0xff]   ;;  %v2800_v36 = vld [vmem:[%s4033_s5 + $0xc4] ss:$8 sps:$4 sm:$0xff]   ;;  %v2802_v37 = vld [vmem:[%s4033_s5 + $0xc0] ss:$8 sps:$4 sm:$0xff]  }
  0x68   : > { %v2763_v35 = vld [vmem:[%s3276_s27 + $0x30] ss:$0 sps:$4 sm:$0xff]   ;;  %v2803_v38 = vld [vmem:[%s4033_s5 + $0xd4] ss:$8 sps:$4 sm:$0xff]   ;;  %v2806_v40 = vld [vmem:[%s4033_s5 + $0xe4] ss:$8 sps:$4 sm:$0xff]  }
  0x69   : > { %v2805_v39 = vld [vmem:[%s4033_s5 + $0xd0] ss:$8 sps:$4 sm:$0xff]   ;;  %v2808_v41 = vld [vmem:[%s4033_s5 + $0xe0] ss:$8 sps:$4 sm:$0xff]   ;;  %v2809_v42 = vld [vmem:[%s4033_s5 + $0xf4] ss:$8 sps:$4 sm:$0xff]  }
  0x6a   : > { %1106 = vmatpush1.bf16.msra.mxu1 %v2775_v14  ;;  %v2811_v43 = vld [vmem:[%s4033_s5 + $0xf0] ss:$8 sps:$4 sm:$0xff]   ;;  %v2812_v44 = vld [vmem:[%s4035_s7] ss:$8 sps:$4 sm:$0xff]   ;;  %v2814_v45 = vld [vmem:[%s4035_s7 + $0x4] ss:$8 sps:$4 sm:$0xff]  }
  0x6b   : > { %2395 = vmatmul.mubr.msk.bf16.gmra.mrb[4].mxu0 %vm732_vm0, %v2758_v10  ;;  %1107 = vmatprep.subr.bf16.mxu1 %v2776_v16  ;;  %v2817_v46 = vld [vmem:[%s4035_s7 + $0x14] ss:$8 sps:$4 sm:$0xff]   ;;  %v2815_v47 = vld [vmem:[%s4035_s7 + $0x10] ss:$8 sps:$4 sm:$0xff]   ;;  %v2820_v48 = vld [vmem:[%s4035_s7 + $0x24] ss:$8 sps:$4 sm:$0xff]  }
  0x6c   : > { %806 = vmatprep.mubr.bf16.mxu0 %v3049_v0  ;;  %1457 = vmatprep.subr.bf16.mxu0 %v2814_v45  ;;  %v2818_v49 = vld [vmem:[%s4035_s7 + $0x20] ss:$8 sps:$4 sm:$0xff]   ;;  %v2823_v51 = vld [vmem:[%s4035_s7 + $0x34] ss:$8 sps:$4 sm:$0xff]   ;;  %v2821_v52 = vld [vmem:[%s4035_s7 + $0x30] ss:$8 sps:$4 sm:$0xff]  }
  0x6d   : > { %1458 = vmatpush1.bf16.msra.mxu0 %v2812_v44  ;;  %v2826_v53 = vld [vmem:[%s4035_s7 + $0x44] ss:$8 sps:$4 sm:$0xff]   ;;  %v2824_v54 = vld [vmem:[%s4035_s7 + $0x40] ss:$8 sps:$4 sm:$0xff]   ;;  %v2829_v55 = vld [vmem:[%s4035_s7 + $0x54] ss:$8 sps:$4 sm:$0xff]  }
  0x6e   : > { %1108 = vmatpush1.bf16.msra.mxu1 %v2778_v17  ;;  %1459 = vmatprep.subr.bf16.mxu0 %v2817_v46  ;;  %v2827_v56 = vld [vmem:[%s4035_s7 + $0x50] ss:$8 sps:$4 sm:$0xff]   ;;  %v2832_v57 = vld [vmem:[%s4035_s7 + $0x64] ss:$8 sps:$4 sm:$0xff]   ;;  %v2830_v58 = vld [vmem:[%s4035_s7 + $0x60] ss:$8 sps:$4 sm:$0xff]  }
  0x6f   : > { %1109 = vmatprep.subr.bf16.mxu1 %v2779_v18  ;;  %v2835_v59 = vld [vmem:[%s4035_s7 + $0x74] ss:$8 sps:$4 sm:$0xff]   ;;  %v2833_v60 = vld [vmem:[%s4035_s7 + $0x70] ss:$8 sps:$4 sm:$0xff]   ;;  %v2838_v61 = vld [vmem:[%s4035_s7 + $0x84] ss:$8 sps:$4 sm:$0xff]  }
  0x70   : > { %v2836_v62 = vld [vmem:[%s4035_s7 + $0x80] ss:$8 sps:$4 sm:$0xff]   ;;  %v2841_v63 = vld [vmem:[%s4035_s7 + $0x94] ss:$8 sps:$4 sm:$0xff]   ;;  %v2844_v1 = vld [vmem:[%s4035_s7 + $0xa4] ss:$8 sps:$4 sm:$0xff]  }
  0x71   : > { %1460 = vmatpush1.bf16.msra.mxu0 %v2815_v47  ;;  %v2842_v2 = vld [vmem:[%s4035_s7 + $0xa0] ss:$8 sps:$4 sm:$0xff]   ;;  %v2847_v3 = vld [vmem:[%s4035_s7 + $0xb4] ss:$8 sps:$4 sm:$0xff]   ;;  %v2845_v4 = vld [vmem:[%s4035_s7 + $0xb0] ss:$8 sps:$4 sm:$0xff]  }
  0x72   : > { %1110 = vmatpush1.bf16.msra.mxu1 %v2781_v19  ;;  %1461 = vmatprep.subr.bf16.mxu0 %v2820_v48  ;;  %v2850_v5 = vld [vmem:[%s4035_s7 + $0xc4] ss:$8 sps:$4 sm:$0xff]   ;;  %v2848_v6 = vld [vmem:[%s4035_s7 + $0xc0] ss:$8 sps:$4 sm:$0xff]   ;;  %v2853_v7 = vld [vmem:[%s4035_s7 + $0xd4] ss:$8 sps:$4 sm:$0xff]  }
  0x73   : > { %2396 = vmatmul.mubr.msk.bf16.gmra.mrb[8].mxu0 %vm732_vm0, %v2759_v15  ;;  %1111 = vmatprep.subr.bf16.mxu1 %v2782_v21  ;;  %v2851_v8 = vld [vmem:[%s4035_s7 + $0xd0] ss:$8 sps:$4 sm:$0xff]   ;;  %v670_v10 = vshrl.u32 %v669_v9, 7  ;;  %v667_v12 = vld [vmem:[%s4032_s4] sm:$0x3]  ;;  %p4080_p1 = scmp.ne.s32.totalorder %s4068_s1, 0 }
  0x74   : > { %816 = vmatprep.mubr.bf16.mxu0 %v3049_v0  ;;  %s3052_s23 = smov [#allocation8]  }
  0x75   : > { %1462 = vmatpush1.bf16.msra.mxu0 %v2818_v49  ;;  %v3486_v11 = vsub.s32 0, %v670_v10  ;;  %v3491_v13 = vsub.s32 1, %v670_v10  ;;  %s2943_s14 = sshll.u32 %s3052_s23, 4  ;;  %s2944_s14 = int_to_ptr.vmem [resolvable:$false] %s2943_s14 }
  0x76   : > { %1112 = vmatpush1.bf16.msra.mxu1 %v2784_v22  ;;  %1463 = vmatprep.subr.bf16.mxu0 %v2823_v51 }
  0x77   : > { %1113 = vmatprep.subr.bf16.mxu1 %v2785_v23  ;;  %v3494_v14 = vrot.slane %v667_v12, %v3486_v11  ;;  %v3497_v15 = vrot.slane %v667_v12, %v3491_v13 }
  0x79   : > { %1464 = vmatpush1.bf16.msra.mxu0 %v2821_v52 }
  0x7a   : > { %1114 = vmatpush1.bf16.msra.mxu1 %v2787_v24  ;;  %1465 = vmatprep.subr.bf16.mxu0 %v2826_v53 }
  0x7b   : > { %2397 = vmatmul.mubr.msk.bf16.gmra.mrb[12].mxu0 %vm732_vm0, %v2760_v20  ;;  %1115 = vmatprep.subr.bf16.mxu1 %v2788_v26 }
  0x7c   : > { %826 = vmatprep.mubr.bf16.mxu0 %v3049_v0 }
  0x7d   : > { %1466 = vmatpush1.bf16.msra.mxu0 %v2824_v54 }
  0x7e   : > { %1116 = vmatpush1.bf16.msra.mxu1 %v2790_v27  ;;  %1467 = vmatprep.subr.bf16.mxu0 %v2829_v55 }
  0x7f   : > { %1117 = vmatprep.subr.bf16.mxu1 %v2791_v28  ;;  %v1571_v28 = vld [vmem:[%s4037_s9] sm:$0x3] }
  0x81   : > { %1468 = vmatpush1.bf16.msra.mxu0 %v2827_v56 }
  0x82   : > { %1118 = vmatpush1.bf16.msra.mxu1 %v2793_v29  ;;  %1469 = vmatprep.subr.bf16.mxu0 %v2832_v57 }
  0x83   : > { %2398 = vmatmul.mubr.msk.bf16.gmra.mrb[16].mxu0 %vm732_vm0, %v2761_v25  ;;  %1119 = vmatprep.subr.bf16.mxu1 %v2794_v31 }
  0x84   : > { %836 = vmatprep.mubr.bf16.mxu0 %v3049_v0 }
  0x85   : > { %1470 = vmatpush1.bf16.msra.mxu0 %v2830_v58 }
  0x86   : > { %1120 = vmatpush1.bf16.msra.mxu1 %v2796_v32  ;;  %1471 = vmatprep.subr.bf16.mxu0 %v2835_v59 }
  0x87   : > { %1121 = vmatprep.subr.bf16.mxu1 %v2797_v33 }
  0x89   : > { %1472 = vmatpush1.bf16.msra.mxu0 %v2833_v60 }
  0x8a   : > { %1122 = vmatpush1.bf16.msra.mxu1 %v2799_v34  ;;  %1473 = vmatprep.subr.bf16.mxu0 %v2838_v61  ;;  %v1629_v34 = vsel %vm1627_vm1, %v1571_v28, 0 }
  0x8b   : > { %2399 = vmatmul.mubr.msk.bf16.gmra.mrb[20].mxu0 %vm732_vm0, %v2762_v30  ;;  %1123 = vmatprep.subr.bf16.mxu1 %v2800_v36 }
  0x8c   : > { %846 = vmatprep.mubr.bf16.mxu0 %v3049_v0  ;;  %v2839_v0 = vld [vmem:[%s4035_s7 + $0x90] ss:$8 sps:$4 sm:$0xff]  }
  0x8d   : > { %1474 = vmatpush1.bf16.msra.mxu0 %v2836_v62 }
  0x8e   : > { %1124 = vmatpush1.bf16.msra.mxu1 %v2802_v37  ;;  %1475 = vmatprep.subr.bf16.mxu0 %v2841_v63 }
  0x8f   : > { %1125 = vmatprep.subr.bf16.mxu1 %v2803_v38 }
  0x91   : > { %1476 = vmatpush1.bf16.msra.mxu0 %v2839_v0 }
  0x92   : > { %1126 = vmatpush1.bf16.msra.mxu1 %v2805_v39  ;;  %1477 = vmatprep.subr.bf16.mxu0 %v2844_v1 }
  0x93   : > { %2400 = vmatmul.mubr.msk.bf16.gmra.mrb[24].mxu0 %vm732_vm0, %v2763_v35  ;;  %1127 = vmatprep.subr.bf16.mxu1 %v2806_v40 }
  0x95   : > { %1478 = vmatpush1.bf16.msra.mxu0 %v2842_v2 }
  0x96   : > { %1128 = vmatpush1.bf16.msra.mxu1 %v2808_v41  ;;  %1479 = vmatprep.subr.bf16.mxu0 %v2847_v3 }
  0x97   : > { %1129 = vmatprep.subr.bf16.mxu1 %v2809_v42 }
  0x99   : > { %1480 = vmatpush1.bf16.msra.mxu0 %v2845_v4 }
  0x9a   : > { %1130 = vmatpush1.bf16.msra.mxu1 %v2811_v43  ;;  %1481 = vmatprep.subr.bf16.mxu0 %v2850_v5 }
  0x9b   : > { %2542 = vmatprep.subr.bf16.mxu1 %v3050_v50 }
  0x9d   : > { %1482 = vmatpush1.bf16.msra.mxu0 %v2848_v6 }
  0x9e   : > { %1483 = vmatprep.subr.bf16.mxu0 %v2853_v7 }
  0xa1   : > { %1484 = vmatpush1.bf16.msra.mxu0 %v2851_v8 }
 0x136   : > { %v788_v16 = vpop.f32.mrb[0].mxu0 }
 0x137   : > { %v789_v17 = vadd.f32 %v788_v16, %v3494_v14  ;;  %v790_v18 = vpop.f32.mrb[1].mxu0 }
 0x138   : > { %v791_v19 = vadd.f32 %v790_v18, %v3497_v15  ;;  %v792_v20 = vpop.f32.mrb[2].mxu0 }
 0x139   : > { %v793_v21 = vadd.f32 %v792_v20, %v3494_v14  ;;  %v794_v22 = vpop.f32.mrb[3].mxu0  ;;  %v855_v24 = vmax.f32 %v789_v17, 0.0 }
 0x13a   : > { %v795_v23 = vadd.f32 %v794_v22, %v3497_v15  ;;  %v856_v26 = vmax.f32 %v791_v19, 0.0 }
 0x13b   : > { %v857_v25 = vmax.f32 %v793_v21, 0.0 }
 0x13c   : > { %v858_v27 = vmax.f32 %v795_v23, 0.0 }
 0x13d   : > { %v881_v29 = vpack.c.bf16 %v857_v25, %v855_v24 }
 0x13e   : > { %v798_v30 = vpop.f32.mrb[4].mxu0  ;;  %v882_v31 = vpack.c.bf16 %v858_v27, %v856_v26 }
 0x13f   : > { %v799_v32 = vadd.f32 %v798_v30, %v3494_v14  ;;  %v800_v33 = vpop.f32.mrb[5].mxu0 }
 0x140   : > { %v801_v35 = vadd.f32 %v800_v33, %v3497_v15  ;;  %v802_v36 = vpop.f32.mrb[6].mxu0  ;;  %1131 = vmatprep.mubr.bf16.mxu1 %v882_v31 }
 0x141   : > { %v803_v37 = vadd.f32 %v802_v36, %v3494_v14  ;;  %v804_v38 = vpop.f32.mrb[7].mxu0  ;;  %1132 = vmatmul.mubr.bf16.vlgmr.msra.gmra.mrb[0].mxu1 %v881_v29  ;;  %v859_v40 = vmax.f32 %v799_v32, 0.0 }
 0x142   : > { %v805_v39 = vadd.f32 %v804_v38, %v3497_v15  ;;  %2543 = vmatpush3.bf16.msra.mxu1 %v1629_v34  ;;  %v860_v42 = vmax.f32 %v801_v35, 0.0 }
 0x143   : > { %v861_v41 = vmax.f32 %v803_v37, 0.0  ;;  %2660 = vmatprep.subr.bf16.mxu1 %v3050_v50 }
 0x144   : > { %v862_v43 = vmax.f32 %v805_v39, 0.0 }
 0x145   : > { %v883_v44 = vpack.c.bf16 %v861_v41, %v859_v40 }
 0x146   : > { %v884_v45 = vpack.c.bf16 %v862_v43, %v860_v42  ;;  %v808_v46 = vpop.f32.mrb[8].mxu0 }
 0x147   : > { %v809_v47 = vadd.f32 %v808_v46, %v3494_v14  ;;  %v810_v48 = vpop.f32.mrb[9].mxu0 }
 0x148   : > { %v811_v49 = vadd.f32 %v810_v48, %v3497_v15  ;;  %v812_v51 = vpop.f32.mrb[10].mxu0  ;;  %1141 = vmatprep.mubr.bf16.mxu1 %v884_v45 }
 0x149   : > { %v813_v52 = vadd.f32 %v812_v51, %v3494_v14  ;;  %v814_v53 = vpop.f32.mrb[11].mxu0  ;;  %1142 = vmatmul.mubr.bf16.gmra.mrb[4].mxu1 %v883_v44  ;;  %v863_v55 = vmax.f32 %v809_v47, 0.0 }
 0x14a   : > { %v815_v54 = vadd.f32 %v814_v53, %v3497_v15  ;;  %v864_v57 = vmax.f32 %v811_v49, 0.0 }
 0x14b   : > { %v865_v56 = vmax.f32 %v813_v52, 0.0 }
 0x14c   : > { %v866_v58 = vmax.f32 %v815_v54, 0.0  ;;  %v2856_v54 = vld [vmem:[%s4035_s7 + $0xe4] ss:$8 sps:$4 sm:$0xff]  }
 0x14d   : > { %v885_v59 = vpack.c.bf16 %v865_v56, %v863_v55  ;;  %1485 = vmatprep.subr.bf16.mxu0 %v2856_v54  ;;  %v2857_v55 = vld [vmem:[%s4035_s7 + $0xf0] ss:$8 sps:$4 sm:$0xff]   ;;  %v2860_v56 = vld [vmem:[%s3347_s20] sm:$0xff]  }
 0x14e   : > { %v886_v60 = vpack.c.bf16 %v866_v58, %v864_v57  ;;  %v818_v61 = vpop.f32.mrb[12].mxu0  ;;  %v2861_v57 = vld [vmem:[%s3347_s20 + $0x8] sm:$0xff]   ;;  %v2862_v58 = vld [vmem:[%s3347_s20 + $0x10] sm:$0xff]   ;;  %v2871_v54 = vld [vmem:[%s4038_s10 + $0x20] sm:$0xff]  }
 0x14f   : > { %v819_v62 = vadd.f32 %v818_v61, %v3494_v14  ;;  %v820_v63 = vpop.f32.mrb[13].mxu0  ;;  %v2865_v61 = vld [vmem:[%s3347_s20 + $0x28] sm:$0xff]  }
 0x150   : > { %v821_v0 = vadd.f32 %v820_v63, %v3497_v15  ;;  %v822_v1 = vpop.f32.mrb[14].mxu0  ;;  %1151 = vmatprep.mubr.bf16.mxu1 %v886_v60  ;;  %v2864_v60 = vld [vmem:[%s3347_s20 + $0x20] sm:$0xff]  }
 0x151   : > { %v823_v2 = vadd.f32 %v822_v1, %v3494_v14  ;;  %v824_v3 = vpop.f32.mrb[15].mxu0  ;;  %1152 = vmatmul.mubr.bf16.gmra.mrb[8].mxu1 %v885_v59  ;;  %v867_v5 = vmax.f32 %v819_v62, 0.0  ;;  %v2863_v59 = vld [vmem:[%s3347_s20 + $0x18] sm:$0xff]   ;;  %v2866_v62 = vld [vmem:[%s3347_s20 + $0x30] ss:$0 sps:$4 sm:$0xff]   ;;  %s4057_s20 = smul.u32 104, %s3576_s19 }
 0x152   : > { %v825_v4 = vadd.f32 %v824_v3, %v3497_v15  ;;  %v868_v7 = vmax.f32 %v821_v0, 0.0  ;;  %v927_v63 = vld [vmem:[%s4034_s6] sm:$0x3] }
 0x153   : > { %v869_v6 = vmax.f32 %v823_v2, 0.0  ;;  %v3579_v0 = vrot.slane %v927_v63, %v3486_v11  ;;  %v3582_v1 = vrot.slane %v927_v63, %v3491_v13  ;;  %s3591_s24 = scalar_lea.vmem [#allocation8], %s4057_s20 }
 0x154   : > { %v870_v8 = vmax.f32 %v825_v4, 0.0  ;;  %s2206_s26 = sshll.u32 %s3591_s24, 4  ;;  %s3824_s26 = int_to_ptr.vmem [resolvable:$true] %s2206_s26 }
 0x155   : > { %v887_v9 = vpack.c.bf16 %v869_v6, %v867_v5  ;;  %s2939_s30 = scalar_lea.vmem %s3824_s26, 1664  ;;  %p2946_p4 = scmp.lt.s32.totalorder %s3824_s26, %s2944_s14 }
 0x156   : > { %v888_v10 = vpack.c.bf16 %v870_v8, %v868_v7  ;;  %v828_v12 = vpop.f32.mrb[16].mxu0  ;;  %p2940_p10 = scmp.ne.s32.totalorder %s3824_s26, %s2939_s30 }
 0x157   : > { %v829_v16 = vadd.f32 %v828_v12, %v3494_v14  ;;  %v830_v17 = vpop.f32.mrb[17].mxu0 }
 0x158   : > { %v831_v18 = vadd.f32 %v830_v17, %v3497_v15  ;;  %v832_v19 = vpop.f32.mrb[18].mxu0  ;;  %1161 = vmatprep.mubr.bf16.mxu1 %v888_v10  ;;  %p2941_p2 = pnand %p2940_p10, %p4080_p1 }
 0x159   : > { %v833_v20 = vadd.f32 %v832_v19, %v3494_v14  ;;  %v834_v21 = vpop.f32.mrb[19].mxu0  ;;  %1162 = vmatmul.mubr.bf16.gmra.mrb[12].mxu1 %v887_v9  ;;  %v871_v23 = vmax.f32 %v829_v16, 0.0 }
 0x15a   : > { %v835_v22 = vadd.f32 %v834_v21, %v3497_v15  ;;  %v872_v25 = vmax.f32 %v831_v18, 0.0  ;;  %v2867_v21 = vld [vmem:[%s4038_s10] sm:$0xff]   ;;  %p2942_p3 = pneg %p2941_p2 }
 0x15b   : > { %v873_v24 = vmax.f32 %v833_v20, 0.0 }
 0x15c   : > { %v874_v26 = vmax.f32 %v835_v22, 0.0 }
 0x15d   : > { %v889_v27 = vpack.c.bf16 %v873_v24, %v871_v23 }
 0x15e   : > { %v890_v28 = vpack.c.bf16 %v874_v26, %v872_v25  ;;  %v838_v29 = vpop.f32.mrb[20].mxu0 }
 0x15f   : > { %v839_v30 = vadd.f32 %v838_v29, %v3494_v14  ;;  %v840_v31 = vpop.f32.mrb[21].mxu0 }
 0x160   : > { %v841_v32 = vadd.f32 %v840_v31, %v3497_v15  ;;  %v842_v33 = vpop.f32.mrb[22].mxu0  ;;  %1171 = vmatprep.mubr.bf16.mxu1 %v890_v28 }
 0x161   : > { %v843_v34 = vadd.f32 %v842_v33, %v3494_v14  ;;  %v844_v35 = vpop.f32.mrb[23].mxu0  ;;  %1172 = vmatmul.mubr.bf16.gmra.mrb[16].mxu1 %v889_v27  ;;  %v875_v37 = vmax.f32 %v839_v30, 0.0  ;;  %v2868_v30 = vld [vmem:[%s4038_s10 + $0x8] sm:$0xff]  }
 0x162   : > { %v845_v36 = vadd.f32 %v844_v35, %v3497_v15  ;;  %v876_v39 = vmax.f32 %v841_v32, 0.0 }
 0x163   : > { %v877_v38 = vmax.f32 %v843_v34, 0.0 }
 0x164   : > { %v878_v40 = vmax.f32 %v845_v36, 0.0 }
 0x165   : > { %v891_v41 = vpack.c.bf16 %v877_v38, %v875_v37  ;;  %v2869_v37 = vld [vmem:[%s4038_s10 + $0x10] sm:$0xff]  }
 0x166   : > { %v892_v42 = vpack.c.bf16 %v878_v40, %v876_v39  ;;  %v848_v43 = vpop.f32.mrb[24].mxu0 }
 0x167   : > { %v849_v44 = vadd.f32 %v848_v43, %v3494_v14  ;;  %v850_v45 = vpop.f32.mrb[25].mxu0  ;;  %v2854_v14 = vld [vmem:[%s4035_s7 + $0xe0] ss:$8 sps:$4 sm:$0xff]  }
 0x168   : > { %1181 = vmatprep.mubr.bf16.mxu1 %v892_v42  ;;  %v851_v46 = vadd.f32 %v850_v45, %v3497_v15  ;;  %v852_v47 = vpop.f32.mrb[26].mxu0  ;;  %1486 = vmatpush1.bf16.msra.mxu0 %v2854_v14  ;;  %v2859_v15 = vld [vmem:[%s4035_s7 + $0xf4] ss:$8 sps:$4 sm:$0xff]  }
 0x169   : > { %v879_v48 = vmax.f32 %v849_v44, 0.0  ;;  %1182 = vmatmul.mubr.bf16.gmra.mrb[20].mxu1 %v891_v41  ;;  %v853_v49 = vpop.f32.mrb[27].mxu0  ;;  %1487 = vmatprep.subr.bf16.mxu0 %v2859_v15 }
 0x16a   : > { %v880_v51 = vmax.f32 %v851_v46, 0.0  ;;  %v2870_v46 = vld [vmem:[%s4038_s10 + $0x18] sm:$0xff]  }
 0x16b   : > { %v893_v53 = vpack.c.bf16 %v879_v48, %v879_v48 }
 0x16c   : > { %v894_v52 = vpack.c.bf16 %v880_v51, %v880_v51  ;;  %1488 = vmatpush1.bf16.msra.mxu0 %v2857_v55 }
 0x16d   : > { %2572 = vmatprep.subr.bf16.mxu0 %v3050_v50 }
 0x16e   : > { %1191 = vmatprep.mubr.bf16.mxu1 %v894_v52 }
 0x171   : > { %1192 = vmatmul.mubr.bf16.gmra.mrb[24].mxu1 %v893_v53 }
 0x172   : > { %2544 = vmatprep.mubr.msk.bf16.mxu1 %vm3051_vm2, %v3050_v50 }
 0x179   : > { %2545 = vmatmul.mubr.msk.bf16.vlgmr.msra.gmra.mrb[28].mxu1 %vm1605_vm3, %v2860_v56 }
 0x17a   : > { %2548 = vmatprep.mubr.msk.bf16.mxu1 %vm3051_vm2, %v3050_v50 }
 0x181   : > { %2549 = vmatmul.mubr.msk.bf16.gmra.mrb[32].mxu1 %vm1605_vm3, %v2861_v57 }
 0x182   : > { %2552 = vmatprep.mubr.msk.bf16.mxu1 %vm3051_vm2, %v3050_v50 }
 0x189   : > { %2553 = vmatmul.mubr.msk.bf16.gmra.mrb[36].mxu1 %vm1605_vm3, %v2862_v58 }
 0x18a   : > { %2556 = vmatprep.mubr.msk.bf16.mxu1 %vm3051_vm2, %v3050_v50 }
 0x191   : > { %2557 = vmatmul.mubr.msk.bf16.gmra.mrb[40].mxu1 %vm1605_vm3, %v2863_v59 }
 0x192   : > { %2560 = vmatprep.mubr.msk.bf16.mxu1 %vm3051_vm2, %v3050_v50 }
 0x199   : > { %2561 = vmatmul.mubr.msk.bf16.gmra.mrb[44].mxu1 %vm1605_vm3, %v2864_v60 }
 0x19a   : > { %2564 = vmatprep.mubr.msk.bf16.mxu1 %vm3051_vm2, %v3050_v50 }
 0x1a1   : > { %2565 = vmatmul.mubr.msk.bf16.gmra.mrb[48].mxu1 %vm1605_vm3, %v2865_v61  ;;  %v2872_v61 = vld [vmem:[%s4038_s10 + $0x28] sm:$0xff]  }
 0x1a2   : > { %2568 = vmatprep.mubr.msk.bf16.mxu1 %vm3051_vm2, %v3050_v50 }
 0x1a9   : > { %2569 = vmatmul.mubr.msk.bf16.gmra.mrb[52].mxu1 %vm1605_vm3, %v2866_v62 }
 0x1aa   : > { %2644 = vmatprep.mubr.msk.bf16.mxu1 %vm3051_vm2, %v3050_v50 }
 0x214   : > { %v1133_v2 = vpop.f32.mrb[0].mxu1 }
 0x215   : > { %v1134_v3 = vadd.f32 %v1133_v2, %v3579_v0  ;;  %v1135_v4 = vpop.f32.mrb[1].mxu1 }
 0x216   : > { %v1136_v5 = vadd.f32 %v1135_v4, %v3582_v1  ;;  %v1137_v6 = vpop.f32.mrb[2].mxu1 }
 0x217   : > { %v1138_v7 = vadd.f32 %v1137_v6, %v3579_v0  ;;  %v1139_v8 = vpop.f32.mrb[3].mxu1  ;;  %v1200_v12 = vmax.f32 %v1134_v3, 0.0  ;;  %v2873_v6 = vld [vmem:[%s4038_s10 + $0x30] sm:$0xff]  }
 0x218   : > { %v1201_v9 = vmax.f32 %v1136_v5, 0.0  ;;  %v1140_v10 = vadd.f32 %v1139_v8, %v3582_v1 }
 0x219   : > { %v1202_v16 = vmax.f32 %v1138_v7, 0.0 }
 0x21a   : > { %1226 = vst [vmem:[%s3591_s24] sm:$0xff] %v1201_v9  ;;  %v1203_v17 = vmax.f32 %v1140_v10, 0.0 }
 0x21b   : > { %v1239_v18 = vpack.c.bf16 %v1202_v16, %v1200_v12 }
 0x21c   : > { %1227 = vst [vmem:[%s3591_s24 + $0x8] sm:$0xff] %v1203_v17  ;;  %v1240_v19 = vpack.c.bf16 %v1203_v17, %v1201_v9  ;;  %v1143_v20 = vpop.f32.mrb[4].mxu1 }
 0x21d   : > { %v1144_v22 = vadd.f32 %v1143_v20, %v3579_v0  ;;  %v1145_v23 = vpop.f32.mrb[5].mxu1 }
 0x21e   : > { %v1146_v24 = vadd.f32 %v1145_v23, %v3582_v1  ;;  %v1147_v25 = vpop.f32.mrb[6].mxu1  ;;  %1489 = vmatprep.mubr.bf16.mxu0 %v1240_v19 }
 0x21f   : > { %v1148_v26 = vadd.f32 %v1147_v25, %v3579_v0  ;;  %v1149_v27 = vpop.f32.mrb[7].mxu1  ;;  %1490 = vmatmul.mubr.bf16.vlgmr.msra.gmra.mrb[28].mxu0 %v1239_v18  ;;  %v1204_v31 = vmax.f32 %v1144_v22, 0.0 }
 0x220   : > { %v1205_v28 = vmax.f32 %v1146_v24, 0.0  ;;  %v1150_v29 = vadd.f32 %v1149_v27, %v3582_v1  ;;  %2573 = vmatpush3.bf16.msra.mxu0 %v2867_v21 }
 0x221   : > { %v1206_v32 = vmax.f32 %v1148_v26, 0.0  ;;  %2574 = vmatprep.subr.bf16.mxu0 %v3050_v50 }
 0x222   : > { %1228 = vst [vmem:[%s3591_s24 + $0x10] sm:$0xff] %v1205_v28  ;;  %v1207_v33 = vmax.f32 %v1150_v29, 0.0 }
 0x223   : > { %v1241_v34 = vpack.c.bf16 %v1206_v32, %v1204_v31 }
 0x224   : > { %1229 = vst [vmem:[%s3591_s24 + $0x18] sm:$0xff] %v1207_v33  ;;  %v1242_v35 = vpack.c.bf16 %v1207_v33, %v1205_v28  ;;  %v1153_v36 = vpop.f32.mrb[8].mxu1  ;;  %2575 = vmatpush3.bf16.msra.mxu0 %v2868_v30 }
 0x225   : > { %v1154_v38 = vadd.f32 %v1153_v36, %v3579_v0  ;;  %v1155_v39 = vpop.f32.mrb[9].mxu1  ;;  %2576 = vmatprep.subr.bf16.mxu0 %v3050_v50 }
 0x226   : > { %v1156_v40 = vadd.f32 %v1155_v39, %v3582_v1  ;;  %v1157_v41 = vpop.f32.mrb[10].mxu1  ;;  %1499 = vmatprep.mubr.bf16.mxu0 %v1242_v35 }
 0x227   : > { %v1158_v42 = vadd.f32 %v1157_v41, %v3579_v0  ;;  %v1159_v43 = vpop.f32.mrb[11].mxu1  ;;  %1500 = vmatmul.mubr.bf16.gmra.mrb[32].mxu0 %v1241_v34  ;;  %v1208_v47 = vmax.f32 %v1154_v38, 0.0 }
 0x228   : > { %v1209_v44 = vmax.f32 %v1156_v40, 0.0  ;;  %v1160_v45 = vadd.f32 %v1159_v43, %v3582_v1  ;;  %2577 = vmatpush3.bf16.msra.mxu0 %v2869_v37 }
 0x229   : > { %v1210_v48 = vmax.f32 %v1158_v42, 0.0  ;;  %2578 = vmatprep.subr.bf16.mxu0 %v3050_v50 }
 0x22a   : > { %1230 = vst [vmem:[%s3591_s24 + $0x20] sm:$0xff] %v1209_v44  ;;  %v1211_v49 = vmax.f32 %v1160_v45, 0.0 }
 0x22b   : > { %v1243_v51 = vpack.c.bf16 %v1210_v48, %v1208_v47 }
 0x22c   : > { %1231 = vst [vmem:[%s3591_s24 + $0x28] sm:$0xff] %v1211_v49  ;;  %v1244_v52 = vpack.c.bf16 %v1211_v49, %v1209_v44  ;;  %v1163_v53 = vpop.f32.mrb[12].mxu1  ;;  %2579 = vmatpush3.bf16.msra.mxu0 %v2870_v46 }
 0x22d   : > { %v1164_v14 = vadd.f32 %v1163_v53, %v3579_v0  ;;  %v1165_v15 = vpop.f32.mrb[13].mxu1  ;;  %2580 = vmatprep.subr.bf16.mxu0 %v3050_v50  ;;  %v3670_v53 = vld [vmem:[#allocation5 + $0x8] sm:$0xff]  }
 0x22e   : > { %v1166_v55 = vadd.f32 %v1165_v15, %v3582_v1  ;;  %v1167_v56 = vpop.f32.mrb[14].mxu1  ;;  %1509 = vmatprep.mubr.bf16.mxu0 %v1244_v52 }
 0x22f   : > { %v1168_v57 = vadd.f32 %v1167_v56, %v3579_v0  ;;  %v1169_v58 = vpop.f32.mrb[15].mxu1  ;;  %1510 = vmatmul.mubr.bf16.gmra.mrb[36].mxu0 %v1243_v51  ;;  %v1212_v62 = vmax.f32 %v1164_v14, 0.0  ;;  %v3676_v14 = vld [vmem:[#allocation5 + $0x10] sm:$0xff]  }
 0x230   : > { %v1213_v59 = vmax.f32 %v1166_v55, 0.0  ;;  %v1170_v60 = vadd.f32 %v1169_v58, %v3582_v1  ;;  %2581 = vmatpush3.bf16.msra.mxu0 %v2871_v54 }
 0x231   : > { %v1214_v63 = vmax.f32 %v1168_v57, 0.0  ;;  %2582 = vmatprep.subr.bf16.mxu0 %v3050_v50  ;;  %v3682_v57 = vld [vmem:[#allocation5 + $0x18] sm:$0xff]  }
 0x232   : > { %1232 = vst [vmem:[%s3591_s24 + $0x30] sm:$0xff] %v1213_v59  ;;  %v1215_v2 = vmax.f32 %v1170_v60, 0.0 }
 0x233   : > { %v1245_v3 = vpack.c.bf16 %v1214_v63, %v1212_v62  ;;  %v3694_v63 = vld [vmem:[#allocation5 + $0x28] sm:$0xff]  }
 0x234   : > { %1233 = vst [vmem:[%s3591_s24 + $0x38] sm:$0xff] %v1215_v2  ;;  %v1246_v4 = vpack.c.bf16 %v1215_v2, %v1213_v59  ;;  %v1173_v5 = vpop.f32.mrb[16].mxu1  ;;  %2583 = vmatpush3.bf16.msra.mxu0 %v2872_v61  ;;  %v3688_v59 = vld [vmem:[#allocation5 + $0x20] sm:$0xff]  }
 0x235   : > { %v1174_v7 = vadd.f32 %v1173_v5, %v3579_v0  ;;  %v1175_v8 = vpop.f32.mrb[17].mxu1  ;;  %2584 = vmatprep.subr.bf16.mxu0 %v3050_v50 }
 0x236   : > { %v1176_v9 = vadd.f32 %v1175_v8, %v3582_v1  ;;  %v1177_v10 = vpop.f32.mrb[18].mxu1  ;;  %1519 = vmatprep.mubr.bf16.mxu0 %v1246_v4 }
 0x237   : > { %v1178_v12 = vadd.f32 %v1177_v10, %v3579_v0  ;;  %v1179_v16 = vpop.f32.mrb[19].mxu1  ;;  %1520 = vmatmul.mubr.bf16.gmra.mrb[40].mxu0 %v1245_v3  ;;  %v1216_v19 = vmax.f32 %v1174_v7, 0.0  ;;  %v3700_v3 = vld [vmem:[#allocation5 + $0x30] sm:$0xff]   ;;  %v3706_v7 = vld [vmem:[#allocation5 + $0x38] sm:$0xff]  }
 0x238   : > { %v1217_v17 = vmax.f32 %v1176_v9, 0.0  ;;  %v1180_v18 = vadd.f32 %v1179_v16, %v3582_v1  ;;  %2585 = vmatpush3.bf16.msra.mxu0 %v2873_v6 }
 0x239   : > { %v1218_v20 = vmax.f32 %v1178_v12, 0.0  ;;  %2586 = vmatprep.subr.bf16.mxu0 %v3050_v50 }
 0x23a   : > { %1234 = vst [vmem:[%s3591_s24 + $0x40] sm:$0xff] %v1217_v17  ;;  %v1219_v21 = vmax.f32 %v1180_v18, 0.0 }
 0x23b   : > { %v1247_v22 = vpack.c.bf16 %v1218_v20, %v1216_v19 }
 0x23c   : > { %1235 = vst [vmem:[%s3591_s24 + $0x48] sm:$0xff] %v1219_v21  ;;  %v1248_v23 = vpack.c.bf16 %v1219_v21, %v1217_v17  ;;  %v1183_v24 = vpop.f32.mrb[20].mxu1 }
 0x23d   : > { %v1184_v25 = vadd.f32 %v1183_v24, %v3579_v0  ;;  %v1185_v26 = vpop.f32.mrb[21].mxu1  ;;  %v1285_v24 = vld [vmem:[%s4036_s8] sm:$0x3] }
 0x23e   : > { %v1186_v27 = vadd.f32 %v1185_v26, %v3582_v1  ;;  %v1187_v28 = vpop.f32.mrb[22].mxu1  ;;  %1529 = vmatprep.mubr.bf16.mxu0 %v1248_v23  ;;  %v3726_v26 = vrot.slane %v1285_v24, %v3491_v13 }
 0x23f   : > { %v1188_v29 = vadd.f32 %v1187_v28, %v3579_v0  ;;  %v1189_v30 = vpop.f32.mrb[23].mxu1  ;;  %1530 = vmatmul.mubr.bf16.gmra.mrb[44].mxu0 %v1247_v22  ;;  %v1220_v33 = vmax.f32 %v1184_v25, 0.0  ;;  %v3723_v25 = vrot.slane %v1285_v24, %v3486_v11 }
 0x240   : > { %v1221_v31 = vmax.f32 %v1186_v27, 0.0  ;;  %v1190_v32 = vadd.f32 %v1189_v30, %v3582_v1 }
 0x241   : > { %v1222_v34 = vmax.f32 %v1188_v29, 0.0 }
 0x242   : > { %1236 = vst [vmem:[%s3591_s24 + $0x50] sm:$0xff] %v1221_v31  ;;  %v1223_v35 = vmax.f32 %v1190_v32, 0.0 }
 0x243   : > { %v1249_v36 = vpack.c.bf16 %v1222_v34, %v1220_v33 }
 0x244   : > { %1237 = vst [vmem:[%s3591_s24 + $0x58] sm:$0xff] %v1223_v35  ;;  %v1250_v37 = vpack.c.bf16 %v1223_v35, %v1221_v31  ;;  %v1193_v38 = vpop.f32.mrb[24].mxu1 }
 0x245   : > { %v1194_v39 = vadd.f32 %v1193_v38, %v3579_v0  ;;  %v1195_v40 = vpop.f32.mrb[25].mxu1  ;;  %v3660_v0 = vld [vmem:[#allocation5] sm:$0xff]  }
 0x246   : > { %v1196_v41 = vadd.f32 %v1195_v40, %v3582_v1  ;;  %v1197_v42 = vpop.f32.mrb[26].mxu1  ;;  %1539 = vmatprep.mubr.bf16.mxu0 %v1250_v37  ;;  %v2874_v1 = vld [vmem:[%s4038_s10 + $0x38] sm:$0xff]   ;;  %2668 = vmatpush3.bf16.msra.mxu1 %v3660_v0 }
 0x247   : > { %v1198_v43 = vpop.f32.mrb[27].mxu1  ;;  %1540 = vmatmul.mubr.bf16.gmra.mrb[48].mxu0 %v1249_v36  ;;  %v1224_v45 = vmax.f32 %v1194_v39, 0.0  ;;  %2661 = vmatprep.subr.bf16.mxu1 %v3050_v50 }
 0x248   : > { %v1225_v44 = vmax.f32 %v1196_v41, 0.0  ;;  %2587 = vmatpush3.bf16.msra.mxu0 %v2874_v1 }
 0x249   : > { %v1251_v47 = vpack.c.bf16 %v1224_v45, %v1224_v45  ;;  %2616 = vmatprep.subr.bf16.mxu0 %v3050_v50 }
 0x24a   : > { %1238 = vst [vmem:[%s3591_s24 + $0x60] sm:$0xff] %v1225_v44  ;;  %v1252_v46 = vpack.c.bf16 %v1225_v44, %v1225_v44  ;;  %2669 = vmatpush3.bf16.msra.mxu1 %v3670_v53  ;;  %s2945_s24 = scalar_lea.vmem %s2944_s14, 3328 }
 0x24b   : > { %2662 = vmatprep.subr.bf16.mxu1 %v3050_v50  ;;  %p2947_p7 = scmp.lt.s32.totalorder %s2945_s24, %s2939_s30 }
 0x24c   : > { %1549 = vmatprep.mubr.bf16.mxu0 %v1252_v46  ;;  %v3658_v48 = vpop.f32.mrb[28].mxu1 }
 0x24d   : > { %v2546_v49 = vpop.f32.mrb[29].mxu1  ;;  %p2948_p8 = por %p2947_p7, %p2946_p4 }
 0x24e   : > { %v3666_v51 = vpop.f32.mrb[30].mxu1  ;;  %2670 = vmatpush3.bf16.msra.mxu1 %v3676_v14 }
 0x24f   : > { %1550 = vmatmul.mubr.bf16.gmra.mrb[52].mxu0 %v1251_v47  ;;  %v2547_v52 = vpop.f32.mrb[31].mxu1  ;;  %2663 = vmatprep.subr.bf16.mxu1 %v3050_v50  ;;  %p2949_p11 = pnand %p2948_p8, %p2942_p3 }
 0x250   : > { %2588 = vmatprep.mubr.msk.bf16.mxu0 %vm3051_vm2, %v3050_v50 }
 0x252   : > { %2671 = vmatpush3.bf16.msra.mxu1 %v3682_v57 }
 0x253   : > { %2664 = vmatprep.subr.bf16.mxu1 %v3050_v50 }
 0x254   : > { %v3674_v54 = vpop.f32.mrb[32].mxu1 }
 0x255   : > { %v2550_v15 = vpop.f32.mrb[33].mxu1 }
 0x256   : > { %v3678_v55 = vpop.f32.mrb[34].mxu1  ;;  %2672 = vmatpush3.bf16.msra.mxu1 %v3688_v59 }
 0x257   : > { %v2551_v56 = vpop.f32.mrb[35].mxu1  ;;  %2665 = vmatprep.subr.bf16.mxu1 %v3050_v50 }
 0x25a   : > { %2673 = vmatpush3.bf16.msra.mxu1 %v3694_v63 }
 0x25b   : > { %2666 = vmatprep.subr.bf16.mxu1 %v3050_v50 }
 0x25c   : > { %v3686_v58 = vpop.f32.mrb[36].mxu1 }
 0x25d   : > { %v2554_v60 = vpop.f32.mrb[37].mxu1 }
 0x25e   : > { %v3690_v61 = vpop.f32.mrb[38].mxu1  ;;  %2674 = vmatpush3.bf16.msra.mxu1 %v3700_v3 }
 0x25f   : > { %v2555_v62 = vpop.f32.mrb[39].mxu1  ;;  %2667 = vmatprep.subr.bf16.mxu1 %v3050_v50 }
 0x262   : > { %2675 = vmatpush3.bf16.msra.mxu1 %v3706_v7 }
 0x264   : > { %v3698_v2 = vpop.f32.mrb[40].mxu1 }
 0x265   : > { %v2558_v4 = vpop.f32.mrb[41].mxu1 }
 0x266   : > { %v3702_v5 = vpop.f32.mrb[42].mxu1 }
 0x267   : > { %v2559_v6 = vpop.f32.mrb[43].mxu1 }
 0x26c   : > { %v3709_v8 = vpop.f32.mrb[44].mxu1 }
 0x26d   : > { %v2562_v9 = vpop.f32.mrb[45].mxu1 }
 0x26e   : > { %v3711_v10 = vpop.f32.mrb[46].mxu1 }
 0x26f   : > { %v2563_v12 = vpop.f32.mrb[47].mxu1 }
 0x274   : > { %v3713_v16 = vpop.f32.mrb[48].mxu1 }
 0x275   : > { %v2566_v17 = vpop.f32.mrb[49].mxu1 }
 0x276   : > { %v3715_v18 = vpop.f32.mrb[50].mxu1 }
 0x277   : > { %v2567_v19 = vpop.f32.mrb[51].mxu1 }
 0x27c   : > { %v3717_v20 = vpop.f32.mrb[52].mxu1 }
 0x27d   : > { %v2570_v21 = vpop.f32.mrb[53].mxu1 }
 0x27e   : > { %v1716_v22 = vpop.f32.mrb[54].mxu1 }
 0x27f   : > { %v2571_v23 = vpop.f32.mrb[55].mxu1 }
 0x2f2   : > { %v1491_v27 = vpop.f32.mrb[28].mxu0 }
 0x2f3   : > { %v1492_v28 = vadd.f32 %v1491_v27, %v3723_v25  ;;  %v1493_v29 = vpop.f32.mrb[29].mxu0 }
 0x2f4   : > { %v1494_v30 = vadd.f32 %v1493_v29, %v3726_v26  ;;  %v1495_v31 = vpop.f32.mrb[30].mxu0 }
 0x2f5   : > { %v1496_v32 = vadd.f32 %v1495_v31, %v3723_v25  ;;  %v1497_v33 = vpop.f32.mrb[31].mxu0  ;;  %v1719_v36 = vmax.f32 %v1492_v28, 0.0 }
 0x2f6   : > { %v1498_v34 = vadd.f32 %v1497_v33, %v3726_v26  ;;  %v1739_v35 = vadd.f32 %v3658_v48, %v1494_v30 }
 0x2f7   : > { %v1720_v11 = vmax.f32 %v1496_v32, 0.0 }
 0x2f8   : > { %v1740_v37 = vadd.f32 %v3666_v51, %v1498_v34  ;;  %v1752_v38 = vmax.f32 %v1739_v35, 0.0 }
 0x2f9   : > { %v1732_v13 = vpack.c.bf16 %v1720_v11, %v1719_v36 }
 0x2fa   : > { %v1753_v39 = vmax.f32 %v1740_v37, 0.0  ;;  %v1501_v40 = vpop.f32.mrb[32].mxu0 }
 0x2fb   : > { %v1502_v41 = vadd.f32 %v1501_v40, %v3723_v25  ;;  %v1503_v42 = vpop.f32.mrb[33].mxu0  ;;  %2589 = vmatmul.mubr.bf16.vlgmr.msra.gmra.mrb[56].mxu0 %v1732_v13 }
 0x2fc   : > { %v3735_v43 = vpack.c.bf16 %v1753_v39, %v1752_v38  ;;  %v1504_v44 = vadd.f32 %v1503_v42, %v3726_v26  ;;  %2617 = vmatpush3.bf16.msra.mxu0 %v3660_v0  ;;  %v1505_v45 = vpop.f32.mrb[34].mxu0  ;;  %2592 = vmatprep.mubr.msk.bf16.mxu0 %vm3051_vm2, %v3050_v50 }
 0x2fd   : > { %v1506_v46 = vadd.f32 %v1505_v45, %v3723_v25  ;;  %v1507_v47 = vpop.f32.mrb[35].mxu0  ;;  %2618 = vmatprep.subr.bf16.mxu0 %v3050_v50  ;;  %v1721_v49 = vmax.f32 %v1502_v41, 0.0 }
 0x2fe   : > { %v1508_v48 = vadd.f32 %v1507_v47, %v3726_v26  ;;  %v1741_v1 = vadd.f32 %v3674_v54, %v1504_v44 }
 0x2ff   : > { %v1722_v51 = vmax.f32 %v1506_v46, 0.0 }
 0x300   : > { %v1742_v52 = vadd.f32 %v3678_v55, %v1508_v48  ;;  %2619 = vmatpush3.bf16.msra.mxu0 %v3670_v53  ;;  %v1754_v15 = vmax.f32 %v1741_v1, 0.0 }
 0x301   : > { %v1733_v0 = vpack.c.bf16 %v1722_v51, %v1721_v49  ;;  %2620 = vmatprep.subr.bf16.mxu0 %v3050_v50 }
 0x302   : > { %v1755_v56 = vmax.f32 %v1742_v52, 0.0  ;;  %v1511_v60 = vpop.f32.mrb[36].mxu0 }
 0x303   : > { %v1512_v62 = vadd.f32 %v1511_v60, %v3723_v25  ;;  %v1513_v4 = vpop.f32.mrb[37].mxu0  ;;  %2593 = vmatmul.mubr.bf16.gmra.mrb[60].mxu0 %v1733_v0 }
 0x304   : > { %v3749_v6 = vpack.c.bf16 %v1755_v56, %v1754_v15  ;;  %v1514_v54 = vadd.f32 %v1513_v4, %v3726_v26  ;;  %v1515_v9 = vpop.f32.mrb[38].mxu0  ;;  %2621 = vmatpush3.bf16.msra.mxu0 %v3676_v14  ;;  %2596 = vmatprep.mubr.msk.bf16.mxu0 %vm3051_vm2, %v3050_v50 }
 0x305   : > { %v1516_v53 = vadd.f32 %v1515_v9, %v3723_v25  ;;  %v1517_v55 = vpop.f32.mrb[39].mxu0  ;;  %2622 = vmatprep.subr.bf16.mxu0 %v3050_v50  ;;  %v1723_v19 = vmax.f32 %v1512_v62, 0.0 }
 0x306   : > { %v1518_v12 = vadd.f32 %v1517_v55, %v3726_v26  ;;  %v1743_v17 = vadd.f32 %v3686_v58, %v1514_v54 }
 0x307   : > { %v1724_v21 = vmax.f32 %v1516_v53, 0.0 }
 0x308   : > { %v1744_v22 = vadd.f32 %v3690_v61, %v1518_v12  ;;  %2623 = vmatpush3.bf16.msra.mxu0 %v3682_v57  ;;  %v1756_v14 = vmax.f32 %v1743_v17, 0.0 }
 0x309   : > { %v1734_v23 = vpack.c.bf16 %v1724_v21, %v1723_v19  ;;  %2624 = vmatprep.subr.bf16.mxu0 %v3050_v50 }
 0x30a   : > { %v1757_v24 = vmax.f32 %v1744_v22, 0.0  ;;  %v1521_v27 = vpop.f32.mrb[40].mxu0 }
 0x30b   : > { %v1522_v28 = vadd.f32 %v1521_v27, %v3723_v25  ;;  %v1523_v29 = vpop.f32.mrb[41].mxu0  ;;  %2597 = vmatmul.mubr.bf16.gmra.mrb[64].mxu0 %v1734_v23 }
 0x30c   : > { %v3763_v30 = vpack.c.bf16 %v1757_v24, %v1756_v14  ;;  %v1524_v58 = vadd.f32 %v1523_v29, %v3726_v26  ;;  %v1525_v31 = vpop.f32.mrb[42].mxu0  ;;  %2600 = vmatprep.mubr.msk.bf16.mxu0 %vm3051_vm2, %v3050_v50  ;;  %2625 = vmatpush3.bf16.msra.mxu0 %v3688_v59 }
 0x30d   : > { %v1526_v57 = vadd.f32 %v1525_v31, %v3723_v25  ;;  %v1527_v61 = vpop.f32.mrb[43].mxu0  ;;  %2626 = vmatprep.subr.bf16.mxu0 %v3050_v50  ;;  %v1725_v34 = vmax.f32 %v1522_v28, 0.0 }
 0x30e   : > { %v1528_v32 = vadd.f32 %v1527_v61, %v3726_v26  ;;  %v1745_v33 = vadd.f32 %v3698_v2, %v1524_v58 }
 0x30f   : > { %v1726_v35 = vmax.f32 %v1526_v57, 0.0 }
 0x310   : > { %v1746_v36 = vadd.f32 %v3702_v5, %v1528_v32  ;;  %2627 = vmatpush3.bf16.msra.mxu0 %v3694_v63  ;;  %v1758_v37 = vmax.f32 %v1745_v33, 0.0 }
 0x311   : > { %v1735_v11 = vpack.c.bf16 %v1726_v35, %v1725_v34  ;;  %2628 = vmatprep.subr.bf16.mxu0 %v3050_v50 }
 0x312   : > { %v1759_v59 = vmax.f32 %v1746_v36, 0.0  ;;  %v1531_v13 = vpop.f32.mrb[44].mxu0 }
 0x313   : > { %v1532_v38 = vadd.f32 %v1531_v13, %v3723_v25  ;;  %v1533_v39 = vpop.f32.mrb[45].mxu0  ;;  %2601 = vmatmul.mubr.bf16.gmra.mrb[68].mxu0 %v1735_v11 }
 0x314   : > { %v1768_v40 = vpack.c.bf16 %v1759_v59, %v1758_v37  ;;  %v1534_v41 = vadd.f32 %v1533_v39, %v3726_v26  ;;  %v1535_v2 = vpop.f32.mrb[46].mxu0  ;;  %2604 = vmatprep.mubr.msk.bf16.mxu0 %vm3051_vm2, %v3050_v50  ;;  %2629 = vmatpush3.bf16.msra.mxu0 %v3700_v3 }
 0x315   : > { %v1536_v63 = vadd.f32 %v1535_v2, %v3723_v25  ;;  %v1537_v5 = vpop.f32.mrb[47].mxu0  ;;  %2630 = vmatprep.subr.bf16.mxu0 %v3050_v50  ;;  %v1727_v45 = vmax.f32 %v1532_v38, 0.0 }
 0x316   : > { %v1538_v42 = vadd.f32 %v1537_v5, %v3726_v26  ;;  %v1747_v44 = vadd.f32 %v3709_v8, %v1534_v41  ;;  %2645 = vmatmul.mubr.bf16.vlgmr.msra.gmra.mrb[56].mxu1 %v1768_v40 }
 0x317   : > { %v1728_v46 = vmax.f32 %v1536_v63, 0.0  ;;  %2648 = vmatprep.mubr.msk.bf16.mxu1 %vm3051_vm2, %v3050_v50 }
 0x318   : > { %v1748_v47 = vadd.f32 %v3711_v10, %v1538_v42  ;;  %2631 = vmatpush3.bf16.msra.mxu0 %v3706_v7  ;;  %v1760_v48 = vmax.f32 %v1747_v44, 0.0 }
 0x319   : > { %v1736_v3 = vpack.c.bf16 %v1728_v46, %v1727_v45 }
 0x31a   : > { %v1761_v1 = vmax.f32 %v1748_v47, 0.0  ;;  %v1541_v49 = vpop.f32.mrb[48].mxu0 }
 0x31b   : > { %v1542_v51 = vadd.f32 %v1541_v49, %v3723_v25  ;;  %v1543_v52 = vpop.f32.mrb[49].mxu0  ;;  %2605 = vmatmul.mubr.bf16.gmra.mrb[72].mxu0 %v1736_v3 }
 0x31c   : > { %v1769_v0 = vpack.c.bf16 %v1761_v1, %v1760_v48  ;;  %v1544_v8 = vadd.f32 %v1543_v52, %v3726_v26  ;;  %v1545_v15 = vpop.f32.mrb[50].mxu0  ;;  %2608 = vmatprep.mubr.msk.bf16.mxu0 %vm3051_vm2, %v3050_v50 }
 0x31d   : > { %v1546_v56 = vadd.f32 %v1545_v15, %v3723_v25  ;;  %v1547_v10 = vpop.f32.mrb[51].mxu0  ;;  %v1729_v62 = vmax.f32 %v1542_v51, 0.0 }
 0x31e   : > { %v1548_v7 = vadd.f32 %v1547_v10, %v3726_v26  ;;  %v1749_v60 = vadd.f32 %v3713_v16, %v1544_v8  ;;  %2649 = vmatmul.mubr.bf16.gmra.mrb[60].mxu1 %v1769_v0 }
 0x31f   : > { %v1730_v4 = vmax.f32 %v1546_v56, 0.0  ;;  %2652 = vmatprep.mubr.msk.bf16.mxu1 %vm3051_vm2, %v3050_v50 }
 0x320   : > { %v1750_v54 = vadd.f32 %v3715_v18, %v1548_v7  ;;  %v1762_v53 = vmax.f32 %v1749_v60, 0.0 }
 0x321   : > { %v1737_v9 = vpack.c.bf16 %v1730_v4, %v1729_v62 }
 0x322   : > { %v1763_v55 = vmax.f32 %v1750_v54, 0.0  ;;  %v1551_v12 = vpop.f32.mrb[52].mxu0 }
 0x323   : > { %v1552_v17 = vadd.f32 %v1551_v12, %v3723_v25  ;;  %v1553_v19 = vpop.f32.mrb[53].mxu0  ;;  %2609 = vmatmul.mubr.bf16.gmra.mrb[76].mxu0 %v1737_v9 }
 0x324   : > { %v1770_v21 = vpack.c.bf16 %v1763_v55, %v1762_v53  ;;  %v1554_v22 = vadd.f32 %v1553_v19, %v3726_v26  ;;  %v1555_v16 = vpop.f32.mrb[54].mxu0  ;;  %2612 = vmatprep.mubr.msk.bf16.mxu0 %vm3051_vm2, %v3050_v50 }
 0x325   : > { %v1731_v23 = vmax.f32 %v1552_v17, 0.0  ;;  %v1556_v14 = vpop.f32.mrb[55].mxu0 }
 0x326   : > { %v1751_v18 = vadd.f32 %v3717_v20, %v1554_v22  ;;  %2653 = vmatmul.mubr.bf16.gmra.mrb[64].mxu1 %v1770_v21 }
 0x327   : > { %2656 = vmatprep.mubr.msk.bf16.mxu1 %vm3051_vm2, %v3050_v50  ;;  %v1738_v24 = vpack.c.bf16 %v1731_v23, %v1731_v23 }
 0x328   : > { %v1764_v25 = vmax.f32 %v1751_v18, 0.0 }
 0x32a   : > { %v1771_v26 = vpack.c.bf16 %v1764_v25, %v1764_v25 }
 0x32b   : > { %2613 = vmatmul.mubr.bf16.gmra.mrb[80].mxu0 %v1738_v24 }
 0x32c   : > { %2632 = vmatprep.mubr.msk.bf16.mxu0 %vm3051_vm2, %v3050_v50 }
 0x32e   : > { %2657 = vmatmul.mubr.bf16.gmra.mrb[68].mxu1 %v1771_v26 }
 0x333   : > { %2633 = vmatmul.mubr.bf16.vlgmr.msra.gmra.mrb[84].mxu0 %v3735_v43 }
 0x334   : > { %2636 = vmatprep.mubr.msk.bf16.mxu0 %vm3051_vm2, %v3050_v50 }
 0x33b   : > { %2637 = vmatmul.mubr.bf16.gmra.mrb[88].mxu0 %v3749_v6 }
 0x33c   : > { %2640 = vmatprep.mubr.msk.bf16.mxu0 %vm3051_vm2, %v3050_v50 }
 0x343   : > { %2641 = vmatmul.mubr.bf16.gmra.mrb[92].mxu0 %v3763_v30 }
 0x344   : > { %2952 = shalt.err (!%p2949_p11)
}
 0x345   : > { %s2953_s15 = scalar_lea.hbm %s3822_s0, 1664  ;;  %s2957_s18 = scalar_lea.hbm %s4045_s17, 3328 }
 0x346   : > { %p2954_p13 = scmp.ne.s32.totalorder %s3822_s0, %s2953_s15  ;;  %p2958_p6 = scmp.lt.u32.totalorder %s3822_s0, %s4045_s17 }
 0x347   : > { %p2959_p9 = scmp.lt.u32.totalorder %s2957_s18, %s2953_s15  ;;  %p2961_p10 = scmp.lt.u32.totalorder %s2953_s15, %s3822_s0 }
 0x348   : > { %p2955_p0 = pnand %p2954_p13, %p4080_p1 }
 0x349   : > { %p2960_p12 = por %p2959_p9, %p2958_p6 }
 0x34a   : > { %p2956_p5 = pneg %p2955_p0 }
 0x34b   : > { %p2962_p2 = por %p2961_p10, %p2960_p12 }
 0x34d   : > { %p2963_p3 = pnand %p2962_p2, %p2956_p5 }
 0x34f   : > { %2966 = shalt.err (!%p2963_p3)
}
 0x350   : > { %s3053_s30 = smov 128   ;;  %s3054_s24 = smov 8   ;;  %v3862_v50 = vld [vmem:[%s4040_s12] ss:$0 sm:$0xff] }
 0x351   : > { %2686 = dma.vmem_to_hbm [thread:$0]  (%p4080_p1), %s3824_s26, 1664, %s3822_s0, %s2173_s22, %s3053_s30, %s3053_s30, %s3054_s24  }
 0x352   : > { %s2381_s16 = sshll.u32 %s4097_s29, 3  ;;  %v3868_v43 = vld [vmem:[%s4039_s11] ss:$0 sm:$0xff]  ;;  %s4081_s0 = sld [smem:[#allocation23_spill]] }
 0x353   : > { %s3857_s15 = scalar_lea.vmem %s4030_s2, %s2381_s16  ;;  %s4083_s27 = smul.u32 104, %s3576_s19 }
 0x354   : > { %v1932_v20 = vld [vmem:[%s3857_s15] sm:$0xff]  ;;  %v1933_v6 = vld [vmem:[%s3857_s15 + $0x8] sm:$0xff]  ;;  %v1934_v33 = vld [vmem:[%s3857_s15 + $0x10] sm:$0xff]  ;;  %s4084_s23 = smul.u32 1664, %s3167_s28  ;;  %s4085_s26 = sld [smem:[#allocation24_spill]] }
 0x355   : > { %v1951_v27 = vmul.f32 %v3862_v50, %v1932_v20  ;;  %v1952_v58 = vmul.f32 %v3862_v50, %v1933_v6  ;;  %v1935_v35 = vld [vmem:[%s3857_s15 + $0x18] sm:$0xff]  ;;  %v1953_v36 = vmul.f32 %v3862_v50, %v1934_v33  ;;  %v1936_v2 = vld [vmem:[%s3857_s15 + $0x20] sm:$0xff]  ;;  %v1937_v5 = vld [vmem:[%s3857_s15 + $0x28] sm:$0xff]  ;;  %s3921_s18 = scalar_lea.vmem [#allocation7], %s4083_s27  ;;  %s2168_s20 = scalar_lea.sflag [#allocation4], %s3576_s19 }
 0x356   : > { %v1954_v13 = vmul.f32 %v3862_v50, %v1935_v35  ;;  %v1955_v42 = vmul.f32 %v3862_v50, %v1936_v2  ;;  %v1956_v47 = vmul.f32 %v3862_v50, %v1937_v5  ;;  %v1938_v51 = vld [vmem:[%s3857_s15 + $0x30] sm:$0xff]  ;;  %v1939_v0 = vld [vmem:[%s3857_s15 + $0x38] sm:$0xff]  ;;  %v1940_v17 = vld [vmem:[%s3857_s15 + $0x40] sm:$0xff] }
 0x357   : > { %v1957_v8 = vmul.f32 %v3862_v50, %v1938_v51  ;;  %v1958_v7 = vmul.f32 %v3862_v50, %v1939_v0  ;;  %v1941_v23 = vld [vmem:[%s3857_s15 + $0x48] sm:$0xff]  ;;  %v1959_v14 = vmul.f32 %v3862_v50, %v1940_v17  ;;  %v1944_v5 = vld [vmem:[%s3857_s15 + $0x60] sm:$0xff] }
 0x358   : > { %s3877_s22 = scalar_lea.vmem %s4081_s0, %s2381_s16  ;;  %s4082_s16 = sld [smem:[#allocation22_spill]]  ;;  %v1960_v26 = vmul.f32 %v3862_v50, %v1941_v23 }
 0x35a   : > { %s4086_s0 = smov %s4085_s26 }
 0x35e   : > { %v3912_v60 = vld [vmem:[%s4082_s16] ss:$0 sm:$0xff]  ;;  %s3055_s16 = smov [#allocation7]  }
 0x35f   : > { %s2971_s27 = sshll.u32 %s3055_s16, 4  ;;  %s2972_s27 = int_to_ptr.vmem [resolvable:$false] %s2971_s27 }
 0x360   : > { %s2973_s28 = scalar_lea.vmem %s2972_s27, 3328 }
 0x3ce   : > { %v1877_v28 = vpop.f32.mrb[56].mxu0 }
 0x3cf   : > { %v1878_v29 = vadd.f32 %v3868_v43, %v1877_v28  ;;  %v2590_v30 = vpop.f32.mrb[57].mxu0 }
 0x3d0   : > { %v1880_v31 = vpop.f32.mrb[58].mxu0 }
 0x3d1   : > { %v1964_v57 = vadd.f32 %v1951_v27, %v1878_v29  ;;  %v1881_v61 = vadd.f32 %v3868_v43, %v1880_v31  ;;  %v2591_v32 = vpop.f32.mrb[59].mxu0  ;;  %v1942_v31 = vld [vmem:[%s3857_s15 + $0x50] sm:$0xff] }
 0x3d2   : > { %v1961_v35 = vmul.f32 %v3862_v50, %v1942_v31 }
 0x3d3   : > { %1977 = vst.msk [vmem:[%s3877_s22] sm:$0xff] %vm1605_vm3, %v1964_v57  ;;  %v1965_v34 = vadd.f32 %v1952_v58, %v1881_v61 }
 0x3d5   : > { %1978 = vst.msk [vmem:[%s3877_s22 + $0x8] sm:$0xff] %vm1605_vm3, %v1965_v34  ;;  %v1943_v34 = vld [vmem:[%s3857_s15 + $0x58] sm:$0xff]  ;;  %s2190_s15 = sshll.u32 %s3921_s18, 4  ;;  %s3981_s15 = int_to_ptr.vmem [resolvable:$true] %s2190_s15 }
 0x3d6   : > { %v1885_v11 = vpop.f32.mrb[60].mxu0  ;;  %s2967_s21 = scalar_lea.vmem %s3981_s15, 1664  ;;  %p2974_p11 = scmp.lt.s32.totalorder %s3981_s15, %s2972_s27 }
 0x3d7   : > { %v1886_v37 = vadd.f32 %v3868_v43, %v1885_v11  ;;  %v2594_v59 = vpop.f32.mrb[61].mxu0  ;;  %p2968_p4 = scmp.ne.s32.totalorder %s3981_s15, %s2967_s21  ;;  %p2975_p13 = scmp.lt.s32.totalorder %s2973_s28, %s2967_s21 }
 0x3d8   : > { %v1888_v38 = vpop.f32.mrb[62].mxu0  ;;  %v1962_v59 = vmul.f32 %v3862_v50, %v1943_v34 }
 0x3d9   : > { %v1966_v39 = vadd.f32 %v1953_v36, %v1886_v37  ;;  %v1889_v40 = vadd.f32 %v3868_v43, %v1888_v38  ;;  %v2595_v41 = vpop.f32.mrb[63].mxu0  ;;  %p2969_p7 = pnand %p2968_p4, %p4080_p1  ;;  %p2976_p0 = por %p2975_p13, %p2974_p11 }
 0x3db   : > { %1979 = vst.msk [vmem:[%s3877_s22 + $0x10] sm:$0xff] %vm1605_vm3, %v1966_v39  ;;  %v1967_v63 = vadd.f32 %v1954_v13, %v1889_v40  ;;  %p2970_p8 = pneg %p2969_p7 }
 0x3dd   : > { %1980 = vst.msk [vmem:[%s3877_s22 + $0x18] sm:$0xff] %vm1605_vm3, %v1967_v63  ;;  %p2977_p5 = pnand %p2976_p0, %p2970_p8 }
 0x3de   : > { %v1893_v44 = vpop.f32.mrb[64].mxu0 }
 0x3df   : > { %v1894_v45 = vadd.f32 %v3868_v43, %v1893_v44  ;;  %v2598_v46 = vpop.f32.mrb[65].mxu0 }
 0x3e0   : > { %v1896_v3 = vpop.f32.mrb[66].mxu0 }
 0x3e1   : > { %v1968_v48 = vadd.f32 %v1955_v42, %v1894_v45  ;;  %v1897_v1 = vadd.f32 %v3868_v43, %v1896_v3  ;;  %v2599_v49 = vpop.f32.mrb[67].mxu0 }
 0x3e3   : > { %1981 = vst.msk [vmem:[%s3877_s22 + $0x20] sm:$0xff] %vm1605_vm3, %v1968_v48  ;;  %v1969_v52 = vadd.f32 %v1956_v47, %v1897_v1  ;;  %v1963_v47 = vmul.f32 %v3862_v50, %v1944_v5 }
 0x3e5   : > { %1982 = vst.msk [vmem:[%s3877_s22 + $0x28] sm:$0xff] %vm1605_vm3, %v1969_v52 }
 0x3e6   : > { %v1901_v15 = vpop.f32.mrb[68].mxu0 }
 0x3e7   : > { %v1902_v56 = vadd.f32 %v3868_v43, %v1901_v15  ;;  %v2602_v10 = vpop.f32.mrb[69].mxu0 }
 0x3e8   : > { %v1904_v62 = vpop.f32.mrb[70].mxu0 }
 0x3e9   : > { %v1970_v4 = vadd.f32 %v1957_v8, %v1902_v56  ;;  %v1905_v54 = vadd.f32 %v3868_v43, %v1904_v62  ;;  %v2603_v9 = vpop.f32.mrb[71].mxu0  ;;  %v2119_v53 = vpop.f32.mrb[56].mxu1 }
 0x3ea   : > { %v2120_v55 = vadd.f32 %v3912_v60, %v2119_v53  ;;  %v2646_v12 = vpop.f32.mrb[57].mxu1 }
 0x3eb   : > { %1983 = vst.msk [vmem:[%s3877_s22 + $0x30] sm:$0xff] %vm1605_vm3, %v1970_v4  ;;  %v1971_v19 = vadd.f32 %v1958_v7, %v1905_v54  ;;  %v2122_v21 = vpop.f32.mrb[58].mxu1 }
 0x3ec   : > { %2155 = vst [vmem:[%s3921_s18 + $0x30] sm:$0xff] %v2120_v55  ;;  %v2123_v22 = vadd.f32 %v3912_v60, %v2122_v21  ;;  %v2647_v16 = vpop.f32.mrb[59].mxu1 }
 0x3ed   : > { %1984 = vst.msk [vmem:[%s3877_s22 + $0x38] sm:$0xff] %vm1605_vm3, %v1971_v19 }
 0x3ee   : > { %2156 = vst [vmem:[%s3921_s18 + $0x38] sm:$0xff] %v2123_v22  ;;  %v1909_v18 = vpop.f32.mrb[72].mxu0 }
 0x3ef   : > { %v1910_v25 = vadd.f32 %v3868_v43, %v1909_v18  ;;  %v2606_v24 = vpop.f32.mrb[73].mxu0 }
 0x3f0   : > { %v1912_v20 = vpop.f32.mrb[74].mxu0 }
 0x3f1   : > { %v1972_v6 = vadd.f32 %v1959_v14, %v1910_v25  ;;  %v1913_v27 = vadd.f32 %v3868_v43, %v1912_v20  ;;  %v2607_v28 = vpop.f32.mrb[75].mxu0  ;;  %v2127_v29 = vpop.f32.mrb[60].mxu1 }
 0x3f2   : > { %v2128_v30 = vadd.f32 %v3912_v60, %v2127_v29  ;;  %v2650_v58 = vpop.f32.mrb[61].mxu1 }
 0x3f3   : > { %1985 = vst.msk [vmem:[%s3877_s22 + $0x40] sm:$0xff] %vm1605_vm3, %v1972_v6  ;;  %v1973_v57 = vadd.f32 %v1960_v26, %v1913_v27  ;;  %v2130_v61 = vpop.f32.mrb[62].mxu1 }
 0x3f4   : > { %2157 = vst [vmem:[%s3921_s18 + $0x40] sm:$0xff] %v2128_v30  ;;  %v2131_v32 = vadd.f32 %v3912_v60, %v2130_v61  ;;  %v2651_v33 = vpop.f32.mrb[63].mxu1 }
 0x3f5   : > { %1986 = vst.msk [vmem:[%s3877_s22 + $0x48] sm:$0xff] %vm1605_vm3, %v1973_v57 }
 0x3f6   : > { %2158 = vst [vmem:[%s3921_s18 + $0x48] sm:$0xff] %v2131_v32  ;;  %v1917_v36 = vpop.f32.mrb[76].mxu0 }
 0x3f7   : > { %v1918_v11 = vadd.f32 %v3868_v43, %v1917_v36  ;;  %v2610_v37 = vpop.f32.mrb[77].mxu0 }
 0x3f8   : > { %v1920_v13 = vpop.f32.mrb[78].mxu0 }
 0x3f9   : > { %v1974_v38 = vadd.f32 %v1961_v35, %v1918_v11  ;;  %v1921_v39 = vadd.f32 %v3868_v43, %v1920_v13  ;;  %v2611_v40 = vpop.f32.mrb[79].mxu0  ;;  %v2135_v41 = vpop.f32.mrb[64].mxu1 }
 0x3fa   : > { %v2136_v2 = vadd.f32 %v3912_v60, %v2135_v41  ;;  %v2654_v63 = vpop.f32.mrb[65].mxu1 }
 0x3fb   : > { %1987 = vst.msk [vmem:[%s3877_s22 + $0x50] sm:$0xff] %vm1605_vm3, %v1974_v38  ;;  %v1975_v42 = vadd.f32 %v1962_v59, %v1921_v39  ;;  %v2138_v44 = vpop.f32.mrb[66].mxu1 }
 0x3fc   : > { %2159 = vst [vmem:[%s3921_s18 + $0x50] sm:$0xff] %v2136_v2  ;;  %v2139_v45 = vadd.f32 %v3912_v60, %v2138_v44  ;;  %v2655_v46 = vpop.f32.mrb[67].mxu1 }
 0x3fd   : > { %1988 = vst.msk [vmem:[%s3877_s22 + $0x58] sm:$0xff] %vm1605_vm3, %v1975_v42 }
 0x3fe   : > { %2160 = vst [vmem:[%s3921_s18 + $0x58] sm:$0xff] %v2139_v45  ;;  %v1925_v3 = vpop.f32.mrb[80].mxu0 }
 0x3ff   : > { %v1926_v48 = vadd.f32 %v3868_v43, %v1925_v3  ;;  %v2614_v1 = vpop.f32.mrb[81].mxu0 }
 0x400   : > { %v1928_v49 = vpop.f32.mrb[82].mxu0 }
 0x401   : > { %v1976_v51 = vadd.f32 %v1963_v47, %v1926_v48  ;;  %v2615_v52 = vpop.f32.mrb[83].mxu0  ;;  %v2143_v0 = vpop.f32.mrb[68].mxu1 }
 0x402   : > { %v2144_v8 = vadd.f32 %v3912_v60, %v2143_v0  ;;  %v2658_v15 = vpop.f32.mrb[69].mxu1 }
 0x403   : > { %1989 = vst.msk [vmem:[%s3877_s22 + $0x60] sm:$0xff] %vm1605_vm3, %v1976_v51  ;;  %v2146_v56 = vpop.f32.mrb[70].mxu1  ;;  %s3979_s22 = scalar_lea.hbm %s4085_s26, %s4084_s23 }
 0x404   : > { %2161 = vst [vmem:[%s3921_s18 + $0x60] sm:$0xff] %v2144_v8  ;;  %v2659_v50 = vpop.f32.mrb[71].mxu1 }
 0x406   : > { %v2095_v10 = vpop.f32.mrb[84].mxu0 }
 0x407   : > { %v2096_v43 = vadd.f32 %v3912_v60, %v2095_v10  ;;  %v2634_v7 = vpop.f32.mrb[85].mxu0 }
 0x408   : > { %v2098_v62 = vpop.f32.mrb[86].mxu0 }
 0x409   : > { %2149 = vst [vmem:[%s3921_s18] sm:$0xff] %v2096_v43  ;;  %v2099_v4 = vadd.f32 %v3912_v60, %v2098_v62  ;;  %v2635_v54 = vpop.f32.mrb[87].mxu0 }
 0x40b   : > { %2150 = vst [vmem:[%s3921_s18 + $0x8] sm:$0xff] %v2099_v4 }
 0x40e   : > { %v2103_v9 = vpop.f32.mrb[88].mxu0 }
 0x40f   : > { %v2104_v53 = vadd.f32 %v3912_v60, %v2103_v9  ;;  %v2638_v55 = vpop.f32.mrb[89].mxu0 }
 0x410   : > { %v2106_v12 = vpop.f32.mrb[90].mxu0 }
 0x411   : > { %2151 = vst [vmem:[%s3921_s18 + $0x10] sm:$0xff] %v2104_v53  ;;  %v2107_v17 = vadd.f32 %v3912_v60, %v2106_v12  ;;  %v2639_v19 = vpop.f32.mrb[91].mxu0 }
 0x413   : > { %2152 = vst [vmem:[%s3921_s18 + $0x18] sm:$0xff] %v2107_v17 }
 0x416   : > { %v2111_v21 = vpop.f32.mrb[92].mxu0 }
 0x417   : > { %v2112_v22 = vadd.f32 %v3912_v60, %v2111_v21  ;;  %v2642_v16 = vpop.f32.mrb[93].mxu0 }
 0x418   : > { %v2114_v23 = vpop.f32.mrb[94].mxu0 }
 0x419   : > { %2153 = vst [vmem:[%s3921_s18 + $0x20] sm:$0xff] %v2112_v22  ;;  %v2115_v14 = vadd.f32 %v3912_v60, %v2114_v23  ;;  %v2643_v18 = vpop.f32.mrb[95].mxu0 }
 0x41b   : > { %2154 = vst [vmem:[%s3921_s18 + $0x28] sm:$0xff] %v2115_v14 }
 0x41c   : > { %2980 = shalt.err (!%p2977_p5)
}
 0x41d   : > { %s2981_s18 = scalar_lea.hbm %s3979_s22, 1664  ;;  %s2985_s29 = scalar_lea.hbm %s4086_s0, 3328 }
 0x41e   : > { %p2982_p6 = scmp.ne.s32.totalorder %s3979_s22, %s2981_s18  ;;  %p2986_p10 = scmp.lt.u32.totalorder %s3979_s22, %s4086_s0 }
 0x41f   : > { %p2987_p2 = scmp.lt.u32.totalorder %s2985_s29, %s2981_s18  ;;  %p2989_p4 = scmp.lt.u32.totalorder %s2981_s18, %s3979_s22 }
 0x420   : > { %p2983_p9 = pnand %p2982_p6, %p4080_p1 }
 0x421   : > { %p2988_p3 = por %p2987_p2, %p2986_p10 }
 0x422   : > { %p2984_p12 = pneg %p2983_p9 }
 0x423   : > { %p2990_p7 = por %p2989_p4, %p2988_p3 }
 0x425   : > { %p2991_p8 = pnand %p2990_p7, %p2984_p12 }
 0x427   : > { %2994 = shalt.err (!%p2991_p8)
}
 0x428   : > { %2685 = dma.vmem_to_hbm [thread:$0]  (%p4080_p1), %s3981_s15, 1664, %s3979_s22, %s2168_s20, %s3053_s30, %s3053_s30, %s3054_s24  }
 0x429 PF: > { %s4087_s21 = sld [smem:[#allocation16_spill]]  ;;  %s4088_s27 = sld [smem:[#allocation14_spill]] }
 0x42a   : > { %s4089_s28 = sld [smem:[#allocation19_spill]] }
 0x42f   : > { %p2707_p11 = scmp.ge.s32.totalorder %s4087_s21, 2  ;;  %s2229_s23 = sand.u32 1, %s4088_s27  }
 0x430   : > { %p4090_p13 = scmp.ne.s32.totalorder %s4089_s28, 0  ;;  %s2230_s18 = scalar_lea.sflag [#allocation4], %s2229_s23 }
 0x432   : > { %p2697_p0 = pnand %p2707_p11, %p4090_p13 }
 0x434   : > { %3020 = dma.done.wait (!%p2697_p0), %s2230_s18, 1664  }
 0x435   : > { %3022 = vsyncadd (!%p2697_p0), %s2230_s18, 4294965632  ;;  %s2239_s1 = scalar_lea.sflag [#allocation9], %s2229_s23 }
 0x436   : > { %3024 = dma.done.wait (!%p2697_p0), %s2239_s1, 1664  }
 0x437   : > { %3026 = vsyncadd (!%p2697_p0), %s2239_s1, 4294965632  ;;  %s4091_s27 = sld [smem:[#allocation17_spill]]  ;;  %s4092_s19 = sld [smem:[#allocation15_spill]] }
 0x438   : > { %s4093_s26 = sld [smem:[#allocation18_spill]]  ;;  %s4094_s24 = smov %s3033_s25 }
 0x43d   : > { %p33_p1 = scmp.ge.s32.totalorder %s4091_s27, 4   ;;  %s4095_s25 = smov %s4092_s19 }
 0x43f   :  { %35 = sbr.rel (!%p33_p1) target bundleno = 13 (0xd), region = 159 }
 0x446   :  { %2244 = vsyncpa [#allocation3], 1 }
 0x447   :  { %2246 = vsyncpa [#allocation3 + $0x1], 1 }
 0x448   :  { %2247 = vsyncpa [#allocation6], 1 }
 0x449   :  { %2248 = vsyncpa [#allocation4], 1 }
 0x44a   :  { %2250 = vsyncpa [#allocation4 + $0x1], 1 }
 0x44b   :  { %2251 = vsyncpa [#allocation9], 1 }
 0x44c   :  { %2253 = vsyncpa [#allocation9 + $0x1], 1 }

</bundles_post_ra>
